<compile_context>
chip_gen: v7x
topology: tpu7x:2x2x1
jax: 0.10.0
libtpu: 0.0.40
codegen_flags: <defaults>
</compile_context>

<pallas_src>
import functools

import jax
import jax.numpy as jnp
from jax import lax
from jax.experimental import pallas as pl
from jax.experimental.pallas import tpu as pltpu

LEAKY_SLOPE = 0.01  # nn.LeakyReLU() default
BN_EPS = 1e-5       # nn.BatchNorm2d default


def _round_up(x, mult):
    return (x + mult - 1) // mult * mult


# ----------------------------------------------------------------------------
# Resident single-pass kernel: grid = (M_tiles,), conv output parked in the
# VMEM-resident output block, BN + LeakyReLU applied in place at the last step.
# ----------------------------------------------------------------------------
def _resident_kernel(patches_ref, w_ref, gamma_ref, beta_ref, o_ref,
                     sum_ref, ssq_ref, *, tm, inv_count):
    s = pl.program_id(0)
    n_tiles = pl.num_programs(0)

    # Conv tile as one MXU matmul: [TM, K] x [K, OC] -> f32 [TM, OC].
    y = jnp.dot(patches_ref[...], w_ref[...], preferred_element_type=jnp.float32)

    @pl.when(s == 0)
    def _init():
        sum_ref[...] = jnp.zeros_like(sum_ref)
        ssq_ref[...] = jnp.zeros_like(ssq_ref)

    # Per-channel batch statistics (zero-padded rows contribute exactly 0, so
    # dividing by the true element count keeps the stats exact).
    sum_ref[...] += jnp.sum(y, axis=0, keepdims=True)
    ssq_ref[...] += jnp.sum(y * y, axis=0, keepdims=True)

    # Park the raw conv output in the resident output block.
    row0 = pl.multiple_of(s * tm, tm)
    o_ref[pl.ds(row0, tm), :] = y

    @pl.when(s == n_tiles - 1)
    def _finalize():
        # Fold gamma / beta / mean / rsqrt into one scale+shift FMA per element.
        # (Conv bias omitted upstream: it cancels in BN mean-centering.)
        mean = sum_ref[...] * inv_count
        var = jnp.maximum(ssq_ref[...] * inv_count - mean * mean, 0.0)
        scale = gamma_ref[...] * lax.rsqrt(var + BN_EPS)
        shift = beta_ref[...] - mean * scale
        z = o_ref[...] * scale + shift
        o_ref[...] = jnp.where(z >= 0, z, LEAKY_SLOPE * z)


# ----------------------------------------------------------------------------
# Streaming 2-phase fallback: phase 0 accumulates stats, phase 1 recomputes the
# cheap matmul and normalizes (used only when the output does not fit in VMEM).
# ----------------------------------------------------------------------------
def _streaming_kernel(patches_ref, w_ref, gamma_ref, beta_ref, o_ref,
                      sum_ref, ssq_ref, sc_ref, sh_ref, *, inv_count):
    phase = pl.program_id(0)
    tile = pl.program_id(1)

    y = jnp.dot(patches_ref[...], w_ref[...], preferred_element_type=jnp.float32)

    @pl.when(jnp.logical_and(phase == 0, tile == 0))
    def _init():
        sum_ref[...] = jnp.zeros_like(sum_ref)
        ssq_ref[...] = jnp.zeros_like(ssq_ref)

    @pl.when(phase == 0)
    def _accumulate():
        sum_ref[...] += jnp.sum(y, axis=0, keepdims=True)
        ssq_ref[...] += jnp.sum(y * y, axis=0, keepdims=True)

    @pl.when(jnp.logical_and(phase == 1, tile == 0))
    def _fold():
        # Hoisted: computed once, reused by every phase-1 tile.
        mean = sum_ref[...] * inv_count
        var = jnp.maximum(ssq_ref[...] * inv_count - mean * mean, 0.0)
        sc_ref[...] = gamma_ref[...] * lax.rsqrt(var + BN_EPS)
        sh_ref[...] = beta_ref[...] - mean * sc_ref[...]

    @pl.when(phase == 1)
    def _normalize():
        z = y * sc_ref[...] + sh_ref[...]
        o_ref[...] = jnp.where(z >= 0, z, LEAKY_SLOPE * z)


# ----------------------------------------------------------------------------
# Wrapper: NCHW in/out (PyTorch parity), patches via XLA's fused patch conv.
# ----------------------------------------------------------------------------
@functools.partial(jax.jit, static_argnames=("kernel_size", "stride", "tm"))
def disc_ren_block(x, conv_w, conv_b, bn_gamma, bn_beta, *,
                   kernel_size, stride, tm=2048):
    """x: [N, C, H, W] float32 (NCHW, like PyTorch). Returns [N, OC, OH, OW]."""
    del conv_b  # exactly cancels under train-mode BatchNorm centering
    n, c, h, w = x.shape
    oc = conv_w.shape[0]
    kh = kw = kernel_size
    pad = 1  # matches nn.Conv2d(..., padding=1)

    # Patch extraction directly in channel-last layout: (N, OH, OW, C*KH*KW),
    # feature dim ordered (C, KH, KW) which matches PyTorch's weight flattening.
    patches = lax.conv_general_dilated_patches(
        x, filter_shape=(kh, kw), window_strides=(stride, stride),
        padding=((pad, pad), (pad, pad)),
        dimension_numbers=("NCHW", "OIHW", "NHWC"))
    _, oh, ow, k = patches.shape          # k == c*kh*kw
    m = n * oh * ow
    patches = patches.reshape(m, k)

    # Large M tiles (whole problem when small); pad rows to a multiple of the
    # tile (zero rows are BN-neutral since we divide by the true count).
    tm = min(tm, _round_up(m, 8))
    m_pad = _round_up(m, tm)
    if m_pad != m:
        patches = jnp.pad(patches, ((0, m_pad - m), (0, 0)))
    n_tiles = m_pad // tm

    # Compact weights / BN params: no OC lane padding (last block dim equals the
    # full array dim, so the (8,128) rule is satisfied; HBM writes stay compact).
    w_mat = jnp.transpose(conv_w.reshape(oc, k))      # [K, OC]
    g_row = bn_gamma.reshape(1, oc)
    be_row = bn_beta.reshape(1, oc)

    inv_count = 1.0 / m

    # VMEM estimate (account for internal (8,128) lane padding of VMEM blocks).
    lane = 128
    k_l = _round_up(k, lane)
    oc_l = _round_up(oc, lane)
    vmem_est = 4 * (2 * m_pad * oc_l          # resident output (2x: conservative)
                    + 2 * tm * k_l            # double-buffered patches tile
                    + _round_up(k, 8) * oc_l  # weights
                    + 8 * oc_l) + (1 << 16)   # stats scratch + slack
    use_resident = vmem_est <= 24 * 1024 * 1024

    common_compiler_params = pltpu.CompilerParams(
        dimension_semantics=("arbitrary",) if use_resident
        else ("arbitrary", "arbitrary"),
        vmem_limit_bytes=32 * 1024 * 1024)

    if use_resident:
        kernel = functools.partial(_resident_kernel, tm=tm, inv_count=inv_count)
        out_flat = pl.pallas_call(
            kernel,
            out_shape=jax.ShapeDtypeStruct((m_pad, oc), jnp.float32),
            grid_spec=pltpu.PrefetchScalarGridSpec(
                num_scalar_prefetch=0,
                grid=(n_tiles,),
                in_specs=[
                    pl.BlockSpec((tm, k), lambda s: (s, 0)),     # patches tile
                    pl.BlockSpec((k, oc), lambda s: (0, 0)),     # weights (resident)
                    pl.BlockSpec((1, oc), lambda s: (0, 0)),     # gamma
                    pl.BlockSpec((1, oc), lambda s: (0, 0)),     # beta
                ],
                # Whole output resident in VMEM; flushed once after the last step.
                out_specs=pl.BlockSpec((m_pad, oc), lambda s: (0, 0)),
                scratch_shapes=[
                    pltpu.VMEM((1, oc), jnp.float32),   # per-channel sum
                    pltpu.VMEM((1, oc), jnp.float32),   # per-channel sum of squares
                ]),
            compiler_params=common_compiler_params,
        )(patches, w_mat, g_row, be_row)
    else:
        kernel = functools.partial(_streaming_kernel, inv_count=inv_count)
        out_flat = pl.pallas_call(
            kernel,
            out_shape=jax.ShapeDtypeStruct((m_pad, oc), jnp.float32),
            grid_spec=pltpu.PrefetchScalarGridSpec(
                num_scalar_prefetch=0,
                grid=(2, n_tiles),  # (phase, M tile): phase 0 = stats, 1 = normalize
                in_specs=[
                    pl.BlockSpec((tm, k), lambda p, i: (i, 0)),
                    pl.BlockSpec((k, oc), lambda p, i: (0, 0)),
                    pl.BlockSpec((1, oc), lambda p, i: (0, 0)),
                    pl.BlockSpec((1, oc), lambda p, i: (0, 0)),
                ],
                # Pin the out block to (0,0) during phase 0 so the never-written
                # buffer is not flushed to HBM; phase 1 writes every tile once.
                out_specs=pl.BlockSpec((tm, oc), lambda p, i: (i * p, 0)),
                scratch_shapes=[
                    pltpu.VMEM((1, oc), jnp.float32),   # sum
                    pltpu.VMEM((1, oc), jnp.float32),   # sum of squares
                    pltpu.VMEM((1, oc), jnp.float32),   # folded scale
                    pltpu.VMEM((1, oc), jnp.float32),   # folded shift
                ]),
            compiler_params=common_compiler_params,
        )(patches, w_mat, g_row, be_row)

    out = out_flat if m_pad == m else out_flat[:m]
    out = out.reshape(n, oh, ow, oc)
    # NCHW only to match the PyTorch interface; chained blocks should stay NHWC.
    return jnp.transpose(out, (0, 3, 1, 2))


# ----------------------------------------------------------------------------
# Pure-JAX reference (keeps the conv bias to verify it indeed cancels under BN)
# ----------------------------------------------------------------------------
def _reference(x, conv_w, conv_b, bn_gamma, bn_beta, *, stride):
    y = lax.conv_general_dilated(
        x, conv_w, window_strides=(stride, stride), padding=((1, 1), (1, 1)),
        dimension_numbers=("NCHW", "OIHW", "NCHW"))
    y = y + conv_b.reshape(1, -1, 1, 1)
    mean = jnp.mean(y, axis=(0, 2, 3), keepdims=True)
    var = jnp.mean((y - mean) ** 2, axis=(0, 2, 3), keepdims=True)
    y = (y - mean) * lax.rsqrt(var + BN_EPS)
    y = y * bn_gamma.reshape(1, -1, 1, 1) + bn_beta.reshape(1, -1, 1, 1)
    return jnp.where(y >= 0, y, LEAKY_SLOPE * y)


if __name__ == "__main__":
    # Small shapes consistent with the module: DiscRenBlock(4, 8, 3, 1)
    N, C, H, W = 2, 4, 16, 16
    OC, K, STRIDE = 8, 3, 1

    key = jax.random.PRNGKey(0)
    kx, kw, kb, kg, kbe = jax.random.split(key, 5)
    x = jax.random.normal(kx, (N, C, H, W), dtype=jnp.float32)
    conv_w = 0.1 * jax.random.normal(kw, (OC, C, K, K), dtype=jnp.float32)
    conv_b = 0.1 * jax.random.normal(kb, (OC,), dtype=jnp.float32)
    bn_gamma = 1.0 + 0.1 * jax.random.normal(kg, (OC,), dtype=jnp.float32)
    bn_beta = 0.1 * jax.random.normal(kbe, (OC,), dtype=jnp.float32)

    out = disc_ren_block(x, conv_w, conv_b, bn_gamma, bn_beta,
                         kernel_size=K, stride=STRIDE)
    out = jax.block_until_ready(out)

    ref = _reference(x, conv_w, conv_b, bn_gamma, bn_beta, stride=STRIDE)
    assert out.shape == (N, OC, H, W), out.shape
    assert jnp.allclose(out, ref, rtol=2e-4, atol=2e-4), \
        float(jnp.max(jnp.abs(out - ref)))

    print("KERNEL_OK")
</pallas_src>

<mosaic_0001>
module attributes {stable_mosaic.version = 11 : i64} {
  func.func @_resident_kernel(%arg0: i32, %arg1: memref<512x36xf32, #tpu.memory_space<vmem>>, %arg2: memref<36x8xf32, #tpu.memory_space<vmem>>, %arg3: memref<1x8xf32, #tpu.memory_space<vmem>>, %arg4: memref<1x8xf32, #tpu.memory_space<vmem>>, %arg5: memref<512x8xf32, #tpu.memory_space<vmem>>, %arg6: memref<1x8xf32, #tpu.memory_space<vmem>>, %arg7: memref<1x8xf32, #tpu.memory_space<vmem>>) attributes {dimension_semantics = [#tpu.dimension_semantics<arbitrary>], iteration_bounds = array<i64: 1>, scalar_prefetch = 0 : i64, scratch_operands = 2 : i64, tpu.core_type = #tpu.core_type<tc>, window_params = [{transform_indices = @transform_0, window_bounds = array<i64: 512, 36>}, {pipeline_mode = #tpu.pipeline_mode<synchronous>, transform_indices = @transform_1, window_bounds = array<i64: 36, 8>}, {pipeline_mode = #tpu.pipeline_mode<synchronous>, transform_indices = @transform_2, window_bounds = array<i64: 1, 8>}, {pipeline_mode = #tpu.pipeline_mode<synchronous>, transform_indices = @transform_3, window_bounds = array<i64: 1, 8>}, {pipeline_mode = #tpu.pipeline_mode<synchronous>, transform_indices = @transform_4, window_bounds = array<i64: 512, 8>}]} {
    %c0 = arith.constant 0 : index
    %c0_0 = arith.constant 0 : index
    %0 = vector.load %arg1[%c0, %c0_0] : memref<512x36xf32, #tpu.memory_space<vmem>>, vector<512x36xf32>
    %c0_1 = arith.constant 0 : index
    %c0_2 = arith.constant 0 : index
    %1 = vector.load %arg2[%c0_1, %c0_2] : memref<36x8xf32, #tpu.memory_space<vmem>>, vector<36x8xf32>
    %cst = arith.constant dense<0.000000e+00> : vector<512x8xf32>
    %2 = tpu.matmul %0, %1, %cst {dimension_numbers = #tpu.dot_dimension_numbers<[1], [0], [0], [1], [0, 0, 1, 1], [], []>} : vector<512x36xf32>, vector<36x8xf32>, vector<512x8xf32> -> vector<512x8xf32>
    %c0_i32 = arith.constant 0 : i32
    %3 = arith.cmpi eq, %arg0, %c0_i32 : i32
    %4 = arith.extui %3 : i1 to i32
    %c0_i32_3 = arith.constant 0 : i32
    %5 = arith.cmpi ne, %4, %c0_i32_3 : i32
    scf.if %5 {
      %cst_17 = arith.constant 0.000000e+00 : f32
      %24 = vector.broadcast %cst_17 : f32 to vector<1x8xf32>
      %c0_18 = arith.constant 0 : index
      %c0_19 = arith.constant 0 : index
      %25 = vector.load %arg6[%c0_18, %c0_19] : memref<1x8xf32, #tpu.memory_space<vmem>>, vector<1x8xf32>
      tpu.vector_store %arg6[%c0_18, %c0_19], %24 {strides = array<i32>} : memref<1x8xf32, #tpu.memory_space<vmem>>, vector<1x8xf32>,
      %cst_20 = arith.constant 0.000000e+00 : f32
      %26 = vector.broadcast %cst_20 : f32 to vector<1x8xf32>
      %c0_21 = arith.constant 0 : index
      %c0_22 = arith.constant 0 : index
      %27 = vector.load %arg7[%c0_21, %c0_22] : memref<1x8xf32, #tpu.memory_space<vmem>>, vector<1x8xf32>
      tpu.vector_store %arg7[%c0_21, %c0_22], %26 {strides = array<i32>} : memref<1x8xf32, #tpu.memory_space<vmem>>, vector<1x8xf32>,
    } else {
    }
    %c0_4 = arith.constant 0 : index
    %c0_5 = arith.constant 0 : index
    %6 = vector.load %arg6[%c0_4, %c0_5] : memref<1x8xf32, #tpu.memory_space<vmem>>, vector<1x8xf32>
    %cst_6 = arith.constant dense<0.000000e+00> : vector<8xf32>
    %7 = vector.multi_reduction <add>, %2, %cst_6 [0] : vector<512x8xf32> to vector<8xf32>
    %8 = vector.shape_cast %7 : vector<8xf32> to vector<1x8xf32>
    %9 = arith.addf %6, %8 : vector<1x8xf32>
    %c0_7 = arith.constant 0 : index
    %c0_8 = arith.constant 0 : index
    %10 = vector.load %arg6[%c0_7, %c0_8] : memref<1x8xf32, #tpu.memory_space<vmem>>, vector<1x8xf32>
    tpu.vector_store %arg6[%c0_7, %c0_8], %9 {strides = array<i32>} : memref<1x8xf32, #tpu.memory_space<vmem>>, vector<1x8xf32>,
    %c0_9 = arith.constant 0 : index
    %c0_10 = arith.constant 0 : index
    %11 = vector.load %arg7[%c0_9, %c0_10] : memref<1x8xf32, #tpu.memory_space<vmem>>, vector<1x8xf32>
    %12 = arith.mulf %2, %2 : vector<512x8xf32>
    %cst_11 = arith.constant dense<0.000000e+00> : vector<8xf32>
    %13 = vector.multi_reduction <add>, %12, %cst_11 [0] : vector<512x8xf32> to vector<8xf32>
    %14 = vector.shape_cast %13 : vector<8xf32> to vector<1x8xf32>
    %15 = arith.addf %11, %14 : vector<1x8xf32>
    %c0_12 = arith.constant 0 : index
    %c0_13 = arith.constant 0 : index
    %16 = vector.load %arg7[%c0_12, %c0_13] : memref<1x8xf32, #tpu.memory_space<vmem>>, vector<1x8xf32>
    tpu.vector_store %arg7[%c0_12, %c0_13], %15 {strides = array<i32>} : memref<1x8xf32, #tpu.memory_space<vmem>>, vector<1x8xf32>,
    %c512_i32 = arith.constant 512 : i32
    %17 = arith.muli %arg0, %c512_i32 : i32
    %18 = tpu.assume_multiple %17, 512 : i32
    %19 = arith.index_cast %18 : i32 to index
    %c0_14 = arith.constant 0 : index
    %20 = vector.load %arg5[%19, %c0_14] : memref<512x8xf32, #tpu.memory_space<vmem>>, vector<512x8xf32>
    tpu.vector_store %arg5[%19, %c0_14], %2 {strides = array<i32>} : memref<512x8xf32, #tpu.memory_space<vmem>>, vector<512x8xf32>,
    %c0_i32_15 = arith.constant 0 : i32
    %21 = arith.cmpi eq, %arg0, %c0_i32_15 : i32
    %22 = arith.extui %21 : i1 to i32
    %c0_i32_16 = arith.constant 0 : i32
    %23 = arith.cmpi ne, %22, %c0_i32_16 : i32
    scf.if %23 {
      %c0_17 = arith.constant 0 : index
      %c0_18 = arith.constant 0 : index
      %24 = vector.load %arg6[%c0_17, %c0_18] : memref<1x8xf32, #tpu.memory_space<vmem>>, vector<1x8xf32>
      %cst_19 = arith.constant 0.001953125 : f32
      %25 = vector.broadcast %cst_19 : f32 to vector<1x8xf32>
      %26 = arith.mulf %24, %25 : vector<1x8xf32>
      %c0_20 = arith.constant 0 : index
      %c0_21 = arith.constant 0 : index
      %27 = vector.load %arg7[%c0_20, %c0_21] : memref<1x8xf32, #tpu.memory_space<vmem>>, vector<1x8xf32>
      %cst_22 = arith.constant 0.001953125 : f32
      %28 = vector.broadcast %cst_22 : f32 to vector<1x8xf32>
      %29 = arith.mulf %27, %28 : vector<1x8xf32>
      %30 = arith.mulf %26, %26 : vector<1x8xf32>
      %31 = arith.subf %29, %30 : vector<1x8xf32>
      %cst_23 = arith.constant 0.000000e+00 : f32
      %32 = vector.broadcast %cst_23 : f32 to vector<1x8xf32>
      %33 = arith.maximumf %31, %32 : vector<1x8xf32>
      %c0_24 = arith.constant 0 : index
      %c0_25 = arith.constant 0 : index
      %34 = vector.load %arg3[%c0_24, %c0_25] : memref<1x8xf32, #tpu.memory_space<vmem>>, vector<1x8xf32>
      %cst_26 = arith.constant 9.99999974E-6 : f32
      %35 = vector.broadcast %cst_26 : f32 to vector<1x8xf32>
      %36 = arith.addf %33, %35 : vector<1x8xf32>
      %37 = math.rsqrt %36 : vector<1x8xf32>
      %38 = arith.mulf %34, %37 : vector<1x8xf32>
      %c0_27 = arith.constant 0 : index
      %c0_28 = arith.constant 0 : index
      %39 = vector.load %arg4[%c0_27, %c0_28] : memref<1x8xf32, #tpu.memory_space<vmem>>, vector<1x8xf32>
      %40 = arith.mulf %26, %38 : vector<1x8xf32>
      %41 = arith.subf %39, %40 : vector<1x8xf32>
      %c0_29 = arith.constant 0 : index
      %c0_30 = arith.constant 0 : index
      %42 = vector.load %arg5[%c0_29, %c0_30] : memref<512x8xf32, #tpu.memory_space<vmem>>, vector<512x8xf32>
      %43 = vector.broadcast %38 : vector<1x8xf32> to vector<512x8xf32>
      %44 = arith.mulf %42, %43 : vector<512x8xf32>
      %45 = vector.broadcast %41 : vector<1x8xf32> to vector<512x8xf32>
      %46 = arith.addf %44, %45 : vector<512x8xf32>
      %cst_31 = arith.constant 0.000000e+00 : f32
      %47 = vector.broadcast %cst_31 : f32 to vector<512x8xf32>
      %48 = arith.cmpf oge, %46, %47 : vector<512x8xf32>
      %cst_32 = arith.constant 0.00999999977 : f32
      %49 = vector.broadcast %cst_32 : f32 to vector<512x8xf32>
      %50 = arith.mulf %49, %46 : vector<512x8xf32>
      %51 = arith.select %48, %46, %50 : vector<512x8xi1>, vector<512x8xf32>
      %c0_33 = arith.constant 0 : index
      %c0_34 = arith.constant 0 : index
      %52 = vector.load %arg5[%c0_33, %c0_34] : memref<512x8xf32, #tpu.memory_space<vmem>>, vector<512x8xf32>
      tpu.vector_store %arg5[%c0_33, %c0_34], %51 {strides = array<i32>} : memref<512x8xf32, #tpu.memory_space<vmem>>, vector<512x8xf32>,
    } else {
    }
    return
  }
  func.func @transform_0(%arg0: i32) -> (i32, i32) {
    %c0_i32 = arith.constant 0 : i32
    %c0_i32_0 = arith.constant 0 : i32
    return %arg0, %c0_i32 : i32, i32
  }
  func.func @transform_1(%arg0: i32) -> (i32, i32) {
    %c0_i32 = arith.constant 0 : i32
    %c0_i32_0 = arith.constant 0 : i32
    %c0_i32_1 = arith.constant 0 : i32
    return %c0_i32, %c0_i32_0 : i32, i32
  }
  func.func @transform_2(%arg0: i32) -> (i32, i32) {
    %c0_i32 = arith.constant 0 : i32
    %c0_i32_0 = arith.constant 0 : i32
    %c0_i32_1 = arith.constant 0 : i32
    return %c0_i32, %c0_i32_0 : i32, i32
  }
  func.func @transform_3(%arg0: i32) -> (i32, i32) {
    %c0_i32 = arith.constant 0 : i32
    %c0_i32_0 = arith.constant 0 : i32
    %c0_i32_1 = arith.constant 0 : i32
    return %c0_i32, %c0_i32_0 : i32, i32
  }
  func.func @transform_4(%arg0: i32) -> (i32, i32) {
    %c0_i32 = arith.constant 0 : i32
    %c0_i32_0 = arith.constant 0 : i32
    %c0_i32_1 = arith.constant 0 : i32
    return %c0_i32, %c0_i32_0 : i32, i32
  }
}

</mosaic_0001>

<bundles_post_ra>
// kernel: disc_ren_block.1
= control target key start
LH: loop header
LB: loop body
LE: loop exit
PB: predicated region body
PF: predicated region fallthrough
CT: control target
= control target key end

     0   :  { %vm86_vm0 = vcmask 293888   ;;  %vm279_vm1 = vcmask 1043456   ;;  %vm672_vm2 = vcmask 57344   ;;  %vm676_vm3 = vcmask 64512   ;;  %s4098_s1 = inlined_call_operand.vmem [shape: f32[36,8], index: 1, kind: input, shape index: {}]   ;;  %s4099_s0 = inlined_call_operand.vmem [shape: f32[512,36], index: 0, kind: input, shape index: {}]   ;;  %s4100_s4 = inlined_call_operand.vmem [shape: f32[512,8], index: 4, kind: output, shape index: {}]   ;;  %s4101_s2 = inlined_call_operand.vmem [shape: f32[1,8], index: 2, kind: input, shape index: {}]   ;;  %s4102_s3 = inlined_call_operand.vmem [shape: f32[1,8], index: 3, kind: input, shape index: {}]  }
   0x1   :  { %v81_v0 = vld [vmem:[%s4098_s1] sm:$0xff]  ;;  %v82_v1 = vld [vmem:[%s4098_s1 + $0x8] sm:$0xff]  ;;  %v83_v2 = vld [vmem:[%s4098_s1 + $0x10] sm:$0xff] }
   0x2   :  { %v1800_v3 = vpack.c.bf16 %v82_v1, %v81_v0  ;;  %v84_v4 = vld [vmem:[%s4098_s1 + $0x18] sm:$0xff]  ;;  %v17_v5 = vld [vmem:[%s4099_s0] sm:$0xff]  ;;  %v18_v8 = vld [vmem:[%s4099_s0 + $0x8] sm:$0xff] }
   0x3   :  { %v1804_v6 = vpack.c.bf16 %v84_v4, %v83_v2  ;;  %1704 = vmatprep.mubr.msk.f32.mxu0 %vm86_vm0, %v17_v5  ;;  %v85_v7 = vld [vmem:[%s4098_s1 + $0x20] sm:$0xf]  ;;  %v19_v9 = vld [vmem:[%s4099_s0 + $0x10] sm:$0xff]  ;;  %v50_v11 = vld [vmem:[%s4099_s0 + $0x108] sm:$0xff] }
   0x4   :  { %1801 = vmatprep.subr.bf16.mxu0 %v1800_v3  ;;  %1808 = vmatprep.subr.bf16.mxu1 %v1800_v3  ;;  %v49_v10 = vld [vmem:[%s4099_s0 + $0x100] sm:$0xff]  ;;  %v51_v12 = vld [vmem:[%s4099_s0 + $0x110] sm:$0xff]  ;;  %v20_v13 = vld [vmem:[%s4099_s0 + $0x18] sm:$0xff] }
   0x5   :  { %1803 = vmatpush3.bf16.msra.mxu0 %v1800_v3  ;;  %1811 = vmatpush3.bf16.msra.mxu1 %v1800_v3  ;;  %v21_v14 = vld [vmem:[%s4099_s0 + $0x20] sm:$0xff]  ;;  %v52_v15 = vld [vmem:[%s4099_s0 + $0x118] sm:$0xff]  ;;  %v22_v17 = vld [vmem:[%s4099_s0 + $0x28] sm:$0xff] }
   0x6   :  { %1805 = vmatprep.subr.bf16.mxu0 %v1804_v6  ;;  %1809 = vmatprep.subr.bf16.mxu1 %v1804_v6  ;;  %v53_v16 = vld [vmem:[%s4099_s0 + $0x120] sm:$0xff]  ;;  %v23_v18 = vld [vmem:[%s4099_s0 + $0x30] sm:$0xff]  ;;  %v54_v19 = vld [vmem:[%s4099_s0 + $0x128] sm:$0xff] }
   0x7   :  { %1752 = vmatprep.mubr.msk.f32.mxu1 %vm86_vm0, %v49_v10  ;;  %v55_v20 = vld [vmem:[%s4099_s0 + $0x130] sm:$0xff]  ;;  %v24_v21 = vld [vmem:[%s4099_s0 + $0x38] sm:$0xff]  ;;  %v25_v22 = vld [vmem:[%s4099_s0 + $0x40] sm:$0xff] }
   0x8   :  { %v56_v23 = vld [vmem:[%s4099_s0 + $0x138] sm:$0xff]  ;;  %v57_v24 = vld [vmem:[%s4099_s0 + $0x140] sm:$0xff]  ;;  %v26_v25 = vld [vmem:[%s4099_s0 + $0x48] sm:$0xff] }
   0x9   :  { %1807 = vmatpush3.bf16.msra.mxu0 %v1804_v6  ;;  %1812 = vmatpush3.bf16.msra.mxu1 %v1804_v6  ;;  %v27_v26 = vld [vmem:[%s4099_s0 + $0x50] sm:$0xff]  ;;  %v58_v27 = vld [vmem:[%s4099_s0 + $0x148] sm:$0xff]  ;;  %v28_v29 = vld [vmem:[%s4099_s0 + $0x58] sm:$0xff] }
   0xa   :  { %1702 = vmatprep.subr.msk.mxu0 %vm279_vm1, %v85_v7  ;;  %1810 = vmatprep.subr.msk.mxu1 %vm279_vm1, %v85_v7  ;;  %v59_v28 = vld [vmem:[%s4099_s0 + $0x150] sm:$0xff]  ;;  %v29_v30 = vld [vmem:[%s4099_s0 + $0x60] sm:$0xff]  ;;  %v60_v31 = vld [vmem:[%s4099_s0 + $0x158] sm:$0xff] }
   0xb   :  { %v61_v32 = vld [vmem:[%s4099_s0 + $0x160] sm:$0xff]  ;;  %v30_v33 = vld [vmem:[%s4099_s0 + $0x68] sm:$0xff]  ;;  %v31_v34 = vld [vmem:[%s4099_s0 + $0x70] sm:$0xff] }
   0xc   :  { %v62_v35 = vld [vmem:[%s4099_s0 + $0x168] sm:$0xff]  ;;  %v63_v36 = vld [vmem:[%s4099_s0 + $0x170] sm:$0xff]  ;;  %v32_v37 = vld [vmem:[%s4099_s0 + $0x78] sm:$0xff] }
   0xd   :  { %1703 = vmatpush3.msk.msra.mxu0 %vm279_vm1, %v85_v7  ;;  %1813 = vmatpush3.msk.msra.mxu1 %vm279_vm1, %v85_v7  ;;  %v33_v38 = vld [vmem:[%s4099_s0 + $0x80] sm:$0xff]  ;;  %v64_v39 = vld [vmem:[%s4099_s0 + $0x178] sm:$0xff]  ;;  %v34_v41 = vld [vmem:[%s4099_s0 + $0x88] sm:$0xff]  ;;  %v1817_v7 = vmov 0.0  }
   0xe   :  { %1705 = vmatmul.mubr.msk.f32.vlgmr.msra.gmra.mrb[0].mxu0 %vm86_vm0, %v18_v8  ;;  %1753 = vmatmul.mubr.msk.f32.vlgmr.msra.gmra.mrb[0].mxu1 %vm86_vm0, %v50_v11  ;;  %v65_v40 = vld [vmem:[%s4099_s0 + $0x180] sm:$0xff]  ;;  %v35_v42 = vld [vmem:[%s4099_s0 + $0x90] sm:$0xff]  ;;  %v66_v43 = vld [vmem:[%s4099_s0 + $0x188] sm:$0xff]  ;;  %673 = vst.msk [vmem:[#allocation2] sm:$0x1] %vm672_vm2, %v1817_v7 }
   0xf   :  { %1707 = vmatprep.mubr.msk.f32.mxu0 %vm86_vm0, %v19_v9  ;;  %1755 = vmatprep.mubr.msk.f32.mxu1 %vm86_vm0, %v51_v12  ;;  %v67_v44 = vld [vmem:[%s4099_s0 + $0x190] sm:$0xff]  ;;  %v36_v45 = vld [vmem:[%s4099_s0 + $0x98] sm:$0xff]  ;;  %v37_v46 = vld [vmem:[%s4099_s0 + $0xa0] sm:$0xff]  ;;  %674 = vst.msk [vmem:[#allocation3] sm:$0x1] %vm672_vm2, %v1817_v7 }
  0x10   :  { %v68_v47 = vld [vmem:[%s4099_s0 + $0x198] sm:$0xff]  ;;  %v69_v48 = vld [vmem:[%s4099_s0 + $0x1a0] sm:$0xff]  ;;  %v38_v49 = vld [vmem:[%s4099_s0 + $0xa8] sm:$0xff] }
  0x11   :  { %v39_v50 = vld [vmem:[%s4099_s0 + $0xb0] sm:$0xff]  ;;  %v70_v51 = vld [vmem:[%s4099_s0 + $0x1a8] sm:$0xff]  ;;  %v40_v53 = vld [vmem:[%s4099_s0 + $0xb8] sm:$0xff] }
  0x12   :  { %1708 = vmatmul.mubr.msk.f32.gmra.mrb[2].mxu0 %vm86_vm0, %v20_v13  ;;  %1756 = vmatmul.mubr.msk.f32.gmra.mrb[2].mxu1 %vm86_vm0, %v52_v15  ;;  %v71_v52 = vld [vmem:[%s4099_s0 + $0x1b0] sm:$0xff]  ;;  %v41_v54 = vld [vmem:[%s4099_s0 + $0xc0] sm:$0xff]  ;;  %v72_v55 = vld [vmem:[%s4099_s0 + $0x1b8] sm:$0xff] }
  0x13   :  { %1710 = vmatprep.mubr.msk.f32.mxu0 %vm86_vm0, %v21_v14  ;;  %1758 = vmatprep.mubr.msk.f32.mxu1 %vm86_vm0, %v53_v16  ;;  %v73_v56 = vld [vmem:[%s4099_s0 + $0x1c0] sm:$0xff]  ;;  %v42_v57 = vld [vmem:[%s4099_s0 + $0xc8] sm:$0xff]  ;;  %v43_v58 = vld [vmem:[%s4099_s0 + $0xd0] sm:$0xff] }
  0x14   :  { %v74_v59 = vld [vmem:[%s4099_s0 + $0x1c8] sm:$0xff]  ;;  %v75_v60 = vld [vmem:[%s4099_s0 + $0x1d0] sm:$0xff]  ;;  %v44_v61 = vld [vmem:[%s4099_s0 + $0xd8] sm:$0xff] }
  0x15   :  { %v45_v62 = vld [vmem:[%s4099_s0 + $0xe0] sm:$0xff]  ;;  %v76_v63 = vld [vmem:[%s4099_s0 + $0x1d8] sm:$0xff]  ;;  %v46_v1 = vld [vmem:[%s4099_s0 + $0xe8] sm:$0xff] }
  0x16   :  { %1711 = vmatmul.mubr.msk.f32.gmra.mrb[4].mxu0 %vm86_vm0, %v22_v17  ;;  %1759 = vmatmul.mubr.msk.f32.gmra.mrb[4].mxu1 %vm86_vm0, %v54_v19  ;;  %v77_v0 = vld [vmem:[%s4099_s0 + $0x1e0] sm:$0xff]  ;;  %v47_v2 = vld [vmem:[%s4099_s0 + $0xf0] sm:$0xff]  ;;  %v78_v3 = vld [vmem:[%s4099_s0 + $0x1e8] sm:$0xff] }
  0x17   :  { %1713 = vmatprep.mubr.msk.f32.mxu0 %vm86_vm0, %v23_v18  ;;  %1761 = vmatprep.mubr.msk.f32.mxu1 %vm86_vm0, %v55_v20  ;;  %v79_v4 = vld [vmem:[%s4099_s0 + $0x1f0] sm:$0xff]  ;;  %v48_v5 = vld [vmem:[%s4099_s0 + $0xf8] sm:$0xff] }
  0x18   :  { %v80_v6 = vld [vmem:[%s4099_s0 + $0x1f8] sm:$0xff] }
  0x1a   :  { %1714 = vmatmul.mubr.msk.f32.gmra.mrb[6].mxu0 %vm86_vm0, %v24_v21  ;;  %1762 = vmatmul.mubr.msk.f32.gmra.mrb[6].mxu1 %vm86_vm0, %v56_v23 }
  0x1b   :  { %1716 = vmatprep.mubr.msk.f32.mxu0 %vm86_vm0, %v25_v22  ;;  %1764 = vmatprep.mubr.msk.f32.mxu1 %vm86_vm0, %v57_v24 }
  0x1e   :  { %1717 = vmatmul.mubr.msk.f32.gmra.mrb[8].mxu0 %vm86_vm0, %v26_v25  ;;  %1765 = vmatmul.mubr.msk.f32.gmra.mrb[8].mxu1 %vm86_vm0, %v58_v27 }
  0x1f   :  { %1719 = vmatprep.mubr.msk.f32.mxu0 %vm86_vm0, %v27_v26  ;;  %1767 = vmatprep.mubr.msk.f32.mxu1 %vm86_vm0, %v59_v28 }
  0x22   :  { %1720 = vmatmul.mubr.msk.f32.gmra.mrb[10].mxu0 %vm86_vm0, %v28_v29  ;;  %1768 = vmatmul.mubr.msk.f32.gmra.mrb[10].mxu1 %vm86_vm0, %v60_v31 }
  0x23   :  { %1722 = vmatprep.mubr.msk.f32.mxu0 %vm86_vm0, %v29_v30  ;;  %1770 = vmatprep.mubr.msk.f32.mxu1 %vm86_vm0, %v61_v32 }
  0x26   :  { %1723 = vmatmul.mubr.msk.f32.gmra.mrb[12].mxu0 %vm86_vm0, %v30_v33  ;;  %1771 = vmatmul.mubr.msk.f32.gmra.mrb[12].mxu1 %vm86_vm0, %v62_v35 }
  0x27   :  { %1725 = vmatprep.mubr.msk.f32.mxu0 %vm86_vm0, %v31_v34  ;;  %1773 = vmatprep.mubr.msk.f32.mxu1 %vm86_vm0, %v63_v36 }
  0x2a   :  { %1726 = vmatmul.mubr.msk.f32.gmra.mrb[14].mxu0 %vm86_vm0, %v32_v37  ;;  %1774 = vmatmul.mubr.msk.f32.gmra.mrb[14].mxu1 %vm86_vm0, %v64_v39 }
  0x2b   :  { %1728 = vmatprep.mubr.msk.f32.mxu0 %vm86_vm0, %v33_v38  ;;  %1776 = vmatprep.mubr.msk.f32.mxu1 %vm86_vm0, %v65_v40 }
  0x2e   :  { %1729 = vmatmul.mubr.msk.f32.gmra.mrb[16].mxu0 %vm86_vm0, %v34_v41  ;;  %1777 = vmatmul.mubr.msk.f32.gmra.mrb[16].mxu1 %vm86_vm0, %v66_v43 }
  0x2f   :  { %1731 = vmatprep.mubr.msk.f32.mxu0 %vm86_vm0, %v35_v42  ;;  %1779 = vmatprep.mubr.msk.f32.mxu1 %vm86_vm0, %v67_v44 }
  0x32   :  { %1732 = vmatmul.mubr.msk.f32.gmra.mrb[18].mxu0 %vm86_vm0, %v36_v45  ;;  %1780 = vmatmul.mubr.msk.f32.gmra.mrb[18].mxu1 %vm86_vm0, %v68_v47 }
  0x33   :  { %1734 = vmatprep.mubr.msk.f32.mxu0 %vm86_vm0, %v37_v46  ;;  %1782 = vmatprep.mubr.msk.f32.mxu1 %vm86_vm0, %v69_v48 }
  0x36   :  { %1735 = vmatmul.mubr.msk.f32.gmra.mrb[20].mxu0 %vm86_vm0, %v38_v49  ;;  %1783 = vmatmul.mubr.msk.f32.gmra.mrb[20].mxu1 %vm86_vm0, %v70_v51 }
  0x37   :  { %1737 = vmatprep.mubr.msk.f32.mxu0 %vm86_vm0, %v39_v50  ;;  %1785 = vmatprep.mubr.msk.f32.mxu1 %vm86_vm0, %v71_v52 }
  0x3a   :  { %1738 = vmatmul.mubr.msk.f32.gmra.mrb[22].mxu0 %vm86_vm0, %v40_v53  ;;  %1786 = vmatmul.mubr.msk.f32.gmra.mrb[22].mxu1 %vm86_vm0, %v72_v55 }
  0x3b   :  { %1740 = vmatprep.mubr.msk.f32.mxu0 %vm86_vm0, %v41_v54  ;;  %1788 = vmatprep.mubr.msk.f32.mxu1 %vm86_vm0, %v73_v56 }
  0x3e   :  { %1741 = vmatmul.mubr.msk.f32.gmra.mrb[24].mxu0 %vm86_vm0, %v42_v57  ;;  %1789 = vmatmul.mubr.msk.f32.gmra.mrb[24].mxu1 %vm86_vm0, %v74_v59 }
  0x3f   :  { %1743 = vmatprep.mubr.msk.f32.mxu0 %vm86_vm0, %v43_v58  ;;  %1791 = vmatprep.mubr.msk.f32.mxu1 %vm86_vm0, %v75_v60 }
  0x42   :  { %1744 = vmatmul.mubr.msk.f32.gmra.mrb[26].mxu0 %vm86_vm0, %v44_v61  ;;  %1792 = vmatmul.mubr.msk.f32.gmra.mrb[26].mxu1 %vm86_vm0, %v76_v63 }
  0x43   :  { %1746 = vmatprep.mubr.msk.f32.mxu0 %vm86_vm0, %v45_v62  ;;  %1794 = vmatprep.mubr.msk.f32.mxu1 %vm86_vm0, %v77_v0 }
  0x46   :  { %1747 = vmatmul.mubr.msk.f32.gmra.mrb[28].mxu0 %vm86_vm0, %v46_v1  ;;  %1795 = vmatmul.mubr.msk.f32.gmra.mrb[28].mxu1 %vm86_vm0, %v78_v3 }
  0x47   :  { %1749 = vmatprep.mubr.msk.f32.mxu0 %vm86_vm0, %v47_v2  ;;  %1797 = vmatprep.mubr.msk.f32.mxu1 %vm86_vm0, %v79_v4 }
  0x4a   :  { %1750 = vmatmul.mubr.msk.f32.gmra.mrb[30].mxu0 %vm86_vm0, %v48_v5  ;;  %1798 = vmatmul.mubr.msk.f32.gmra.mrb[30].mxu1 %vm86_vm0, %v80_v6 }
  0xe1   :  { %v1706_v8 = vpop.f32.mrb[0].mxu0  ;;  %v2121_v12 = vpop.f32.mrb[0].mxu1 }
  0xe2   :  { %v678_v9 = vsel %vm676_vm3, %v1706_v8, 0.0  ;;  %v815_v10 = vmul.f32 %v1706_v8, %v1706_v8  ;;  %1016 = vst.msk [vmem:[%s4100_s4 + $0x8] sm:$0xff] %vm676_vm3, %v1706_v8  ;;  %v349_v11 = vpop.f32.mrb[1].mxu0  ;;  %1048 = vst.msk [vmem:[%s4100_s4 + $0x108] sm:$0xff] %vm676_vm3, %v2121_v12  ;;  %v2133_v15 = vpop.f32.mrb[1].mxu1 }
  0xe3   :  { %v677_v13 = vsel %vm676_vm3, %v349_v11, 0.0  ;;  %v814_v14 = vmul.f32 %v349_v11, %v349_v11  ;;  %1015 = vst.msk [vmem:[%s4100_s4] sm:$0xff] %vm676_vm3, %v349_v11  ;;  %1047 = vst.msk [vmem:[%s4100_s4 + $0x100] sm:$0xff] %vm676_vm3, %v2133_v15 }
  0xe4   :  { %v879_v16 = vsel %vm676_vm3, %v815_v10, 0.0  ;;  %v679_v17 = vadd.f32 %v678_v9, %v677_v13 }
  0xe5   :  { %v878_v18 = vsel %vm676_vm3, %v814_v14, 0.0  ;;  %v1709_v19 = vpop.f32.mrb[2].mxu0  ;;  %v2146_v22 = vpop.f32.mrb[2].mxu1 }
  0xe6   :  { %v880_v20 = vadd.f32 %v879_v16, %v878_v18  ;;  %1018 = vst.msk [vmem:[%s4100_s4 + $0x18] sm:$0xff] %vm676_vm3, %v1709_v19  ;;  %v359_v21 = vpop.f32.mrb[3].mxu0  ;;  %v817_v23 = vmul.f32 %v1709_v19, %v1709_v19  ;;  %1050 = vst.msk [vmem:[%s4100_s4 + $0x118] sm:$0xff] %vm676_vm3, %v2146_v22  ;;  %v2158_v26 = vpop.f32.mrb[3].mxu1  ;;  %v682_v28 = vsel %vm676_vm3, %v1709_v19, 0.0 }
  0xe7   :  { %v680_v24 = vsel %vm676_vm3, %v359_v21, 0.0  ;;  %v816_v25 = vmul.f32 %v359_v21, %v359_v21  ;;  %1017 = vst.msk [vmem:[%s4100_s4 + $0x10] sm:$0xff] %vm676_vm3, %v359_v21  ;;  %1049 = vst.msk [vmem:[%s4100_s4 + $0x110] sm:$0xff] %vm676_vm3, %v2158_v26 }
  0xe8   :  { %v681_v27 = vadd.f32 %v680_v24, %v679_v17  ;;  %v883_v35 = vsel %vm676_vm3, %v817_v23, 0.0 }
  0xe9   :  { %v881_v29 = vsel %vm676_vm3, %v816_v25, 0.0  ;;  %v1712_v30 = vpop.f32.mrb[4].mxu0  ;;  %v2171_v34 = vpop.f32.mrb[4].mxu1 }
  0xea   :  { %v882_v31 = vadd.f32 %v881_v29, %v880_v20  ;;  %1020 = vst.msk [vmem:[%s4100_s4 + $0x28] sm:$0xff] %vm676_vm3, %v1712_v30  ;;  %v369_v32 = vpop.f32.mrb[5].mxu0  ;;  %v683_v33 = vadd.f32 %v682_v28, %v681_v27  ;;  %v819_v36 = vmul.f32 %v1712_v30, %v1712_v30  ;;  %1052 = vst.msk [vmem:[%s4100_s4 + $0x128] sm:$0xff] %vm676_vm3, %v2171_v34  ;;  %v2184_v39 = vpop.f32.mrb[5].mxu1  ;;  %v686_v42 = vsel %vm676_vm3, %v1712_v30, 0.0 }
  0xeb   :  { %v684_v37 = vsel %vm676_vm3, %v369_v32, 0.0  ;;  %v818_v38 = vmul.f32 %v369_v32, %v369_v32  ;;  %1019 = vst.msk [vmem:[%s4100_s4 + $0x20] sm:$0xff] %vm676_vm3, %v369_v32  ;;  %1051 = vst.msk [vmem:[%s4100_s4 + $0x120] sm:$0xff] %vm676_vm3, %v2184_v39 }
  0xec   :  { %v685_v40 = vadd.f32 %v684_v37, %v683_v33  ;;  %v884_v41 = vadd.f32 %v883_v35, %v882_v31  ;;  %v887_v49 = vsel %vm676_vm3, %v819_v36, 0.0 }
  0xed   :  { %v885_v43 = vsel %vm676_vm3, %v818_v38, 0.0  ;;  %v1715_v44 = vpop.f32.mrb[6].mxu0  ;;  %v2197_v48 = vpop.f32.mrb[6].mxu1 }
  0xee   :  { %v886_v45 = vadd.f32 %v885_v43, %v884_v41  ;;  %1022 = vst.msk [vmem:[%s4100_s4 + $0x38] sm:$0xff] %vm676_vm3, %v1715_v44  ;;  %v379_v46 = vpop.f32.mrb[7].mxu0  ;;  %v687_v47 = vadd.f32 %v686_v42, %v685_v40  ;;  %v821_v50 = vmul.f32 %v1715_v44, %v1715_v44  ;;  %1054 = vst.msk [vmem:[%s4100_s4 + $0x138] sm:$0xff] %vm676_vm3, %v2197_v48  ;;  %v2210_v53 = vpop.f32.mrb[7].mxu1  ;;  %v690_v56 = vsel %vm676_vm3, %v1715_v44, 0.0 }
  0xef   :  { %v688_v51 = vsel %vm676_vm3, %v379_v46, 0.0  ;;  %v820_v52 = vmul.f32 %v379_v46, %v379_v46  ;;  %1021 = vst.msk [vmem:[%s4100_s4 + $0x30] sm:$0xff] %vm676_vm3, %v379_v46  ;;  %1053 = vst.msk [vmem:[%s4100_s4 + $0x130] sm:$0xff] %vm676_vm3, %v2210_v53 }
  0xf0   :  { %v689_v54 = vadd.f32 %v688_v51, %v687_v47  ;;  %v888_v55 = vadd.f32 %v887_v49, %v886_v45  ;;  %v891_v63 = vsel %vm676_vm3, %v821_v50, 0.0 }
  0xf1   :  { %v889_v57 = vsel %vm676_vm3, %v820_v52, 0.0  ;;  %v1718_v58 = vpop.f32.mrb[8].mxu0  ;;  %v2223_v62 = vpop.f32.mrb[8].mxu1 }
  0xf2   :  { %v890_v59 = vadd.f32 %v889_v57, %v888_v55  ;;  %1024 = vst.msk [vmem:[%s4100_s4 + $0x48] sm:$0xff] %vm676_vm3, %v1718_v58  ;;  %v389_v60 = vpop.f32.mrb[9].mxu0  ;;  %v691_v61 = vadd.f32 %v690_v56, %v689_v54  ;;  %v823_v0 = vmul.f32 %v1718_v58, %v1718_v58  ;;  %1056 = vst.msk [vmem:[%s4100_s4 + $0x148] sm:$0xff] %vm676_vm3, %v2223_v62  ;;  %v2236_v3 = vpop.f32.mrb[9].mxu1  ;;  %v694_v6 = vsel %vm676_vm3, %v1718_v58, 0.0 }
  0xf3   :  { %v692_v1 = vsel %vm676_vm3, %v389_v60, 0.0  ;;  %v822_v2 = vmul.f32 %v389_v60, %v389_v60  ;;  %1023 = vst.msk [vmem:[%s4100_s4 + $0x40] sm:$0xff] %vm676_vm3, %v389_v60  ;;  %1055 = vst.msk [vmem:[%s4100_s4 + $0x140] sm:$0xff] %vm676_vm3, %v2236_v3 }
  0xf4   :  { %v693_v4 = vadd.f32 %v692_v1, %v691_v61  ;;  %v892_v5 = vadd.f32 %v891_v63, %v890_v59  ;;  %v895_v14 = vsel %vm676_vm3, %v823_v0, 0.0 }
  0xf5   :  { %v893_v7 = vsel %vm676_vm3, %v822_v2, 0.0  ;;  %v1721_v8 = vpop.f32.mrb[10].mxu0  ;;  %v2249_v13 = vpop.f32.mrb[10].mxu1 }
  0xf6   :  { %v894_v9 = vadd.f32 %v893_v7, %v892_v5  ;;  %1026 = vst.msk [vmem:[%s4100_s4 + $0x58] sm:$0xff] %vm676_vm3, %v1721_v8  ;;  %v399_v10 = vpop.f32.mrb[11].mxu0  ;;  %v695_v11 = vadd.f32 %v694_v6, %v693_v4  ;;  %v825_v16 = vmul.f32 %v1721_v8, %v1721_v8  ;;  %1058 = vst.msk [vmem:[%s4100_s4 + $0x158] sm:$0xff] %vm676_vm3, %v2249_v13  ;;  %v2262_v19 = vpop.f32.mrb[11].mxu1  ;;  %v698_v23 = vsel %vm676_vm3, %v1721_v8, 0.0 }
  0xf7   :  { %v696_v17 = vsel %vm676_vm3, %v399_v10, 0.0  ;;  %v824_v18 = vmul.f32 %v399_v10, %v399_v10  ;;  %1025 = vst.msk [vmem:[%s4100_s4 + $0x50] sm:$0xff] %vm676_vm3, %v399_v10  ;;  %1057 = vst.msk [vmem:[%s4100_s4 + $0x150] sm:$0xff] %vm676_vm3, %v2262_v19 }
  0xf8   :  { %v697_v20 = vadd.f32 %v696_v17, %v695_v11  ;;  %v896_v21 = vadd.f32 %v895_v14, %v894_v9  ;;  %v899_v31 = vsel %vm676_vm3, %v825_v16, 0.0 }
  0xf9   :  { %v897_v24 = vsel %vm676_vm3, %v824_v18, 0.0  ;;  %v1724_v25 = vpop.f32.mrb[12].mxu0  ;;  %v2275_v30 = vpop.f32.mrb[12].mxu1 }
  0xfa   :  { %v898_v27 = vadd.f32 %v897_v24, %v896_v21  ;;  %1028 = vst.msk [vmem:[%s4100_s4 + $0x68] sm:$0xff] %vm676_vm3, %v1724_v25  ;;  %v409_v28 = vpop.f32.mrb[13].mxu0  ;;  %v699_v29 = vadd.f32 %v698_v23, %v697_v20  ;;  %v827_v32 = vmul.f32 %v1724_v25, %v1724_v25  ;;  %1060 = vst.msk [vmem:[%s4100_s4 + $0x168] sm:$0xff] %vm676_vm3, %v2275_v30  ;;  %v2288_v36 = vpop.f32.mrb[13].mxu1  ;;  %v702_v40 = vsel %vm676_vm3, %v1724_v25, 0.0 }
  0xfb   :  { %v700_v33 = vsel %vm676_vm3, %v409_v28, 0.0  ;;  %v826_v35 = vmul.f32 %v409_v28, %v409_v28  ;;  %1027 = vst.msk [vmem:[%s4100_s4 + $0x60] sm:$0xff] %vm676_vm3, %v409_v28  ;;  %1059 = vst.msk [vmem:[%s4100_s4 + $0x160] sm:$0xff] %vm676_vm3, %v2288_v36 }
  0xfc   :  { %v701_v37 = vadd.f32 %v700_v33, %v699_v29  ;;  %v900_v38 = vadd.f32 %v899_v31, %v898_v27  ;;  %v903_v47 = vsel %vm676_vm3, %v827_v32, 0.0 }
  0xfd   :  { %v901_v41 = vsel %vm676_vm3, %v826_v35, 0.0  ;;  %v1727_v42 = vpop.f32.mrb[14].mxu0  ;;  %v2301_v46 = vpop.f32.mrb[14].mxu1 }
  0xfe   :  { %v902_v43 = vadd.f32 %v901_v41, %v900_v38  ;;  %1030 = vst.msk [vmem:[%s4100_s4 + $0x78] sm:$0xff] %vm676_vm3, %v1727_v42  ;;  %v419_v44 = vpop.f32.mrb[15].mxu0  ;;  %v703_v45 = vadd.f32 %v702_v40, %v701_v37  ;;  %v829_v49 = vmul.f32 %v1727_v42, %v1727_v42  ;;  %1062 = vst.msk [vmem:[%s4100_s4 + $0x178] sm:$0xff] %vm676_vm3, %v2301_v46  ;;  %v2314_v52 = vpop.f32.mrb[15].mxu1  ;;  %v706_v56 = vsel %vm676_vm3, %v1727_v42, 0.0 }
  0xff   :  { %v704_v50 = vsel %vm676_vm3, %v419_v44, 0.0  ;;  %v828_v51 = vmul.f32 %v419_v44, %v419_v44  ;;  %1029 = vst.msk [vmem:[%s4100_s4 + $0x70] sm:$0xff] %vm676_vm3, %v419_v44  ;;  %1061 = vst.msk [vmem:[%s4100_s4 + $0x170] sm:$0xff] %vm676_vm3, %v2314_v52 }
 0x100   :  { %v705_v54 = vadd.f32 %v704_v50, %v703_v45  ;;  %v904_v55 = vadd.f32 %v903_v47, %v902_v43  ;;  %v907_v0 = vsel %vm676_vm3, %v829_v49, 0.0 }
 0x101   :  { %v905_v57 = vsel %vm676_vm3, %v828_v51, 0.0  ;;  %v1730_v58 = vpop.f32.mrb[16].mxu0  ;;  %v2327_v63 = vpop.f32.mrb[16].mxu1 }
 0x102   :  { %v906_v59 = vadd.f32 %v905_v57, %v904_v55  ;;  %1032 = vst.msk [vmem:[%s4100_s4 + $0x88] sm:$0xff] %vm676_vm3, %v1730_v58  ;;  %v429_v60 = vpop.f32.mrb[17].mxu0  ;;  %v707_v61 = vadd.f32 %v706_v56, %v705_v54  ;;  %v831_v1 = vmul.f32 %v1730_v58, %v1730_v58  ;;  %1064 = vst.msk [vmem:[%s4100_s4 + $0x188] sm:$0xff] %vm676_vm3, %v2327_v63  ;;  %v2340_v5 = vpop.f32.mrb[17].mxu1  ;;  %v710_v8 = vsel %vm676_vm3, %v1730_v58, 0.0 }
 0x103   :  { %v708_v2 = vsel %vm676_vm3, %v429_v60, 0.0  ;;  %v830_v4 = vmul.f32 %v429_v60, %v429_v60  ;;  %1031 = vst.msk [vmem:[%s4100_s4 + $0x80] sm:$0xff] %vm676_vm3, %v429_v60  ;;  %1063 = vst.msk [vmem:[%s4100_s4 + $0x180] sm:$0xff] %vm676_vm3, %v2340_v5 }
 0x104   :  { %v709_v6 = vadd.f32 %v708_v2, %v707_v61  ;;  %v908_v7 = vadd.f32 %v907_v0, %v906_v59  ;;  %v911_v18 = vsel %vm676_vm3, %v831_v1, 0.0 }
 0x105   :  { %v909_v9 = vsel %vm676_vm3, %v830_v4, 0.0  ;;  %v1733_v10 = vpop.f32.mrb[18].mxu0  ;;  %v2353_v17 = vpop.f32.mrb[18].mxu1 }
 0x106   :  { %v910_v11 = vadd.f32 %v909_v9, %v908_v7  ;;  %1034 = vst.msk [vmem:[%s4100_s4 + $0x98] sm:$0xff] %vm676_vm3, %v1733_v10  ;;  %v439_v14 = vpop.f32.mrb[19].mxu0  ;;  %v711_v16 = vadd.f32 %v710_v8, %v709_v6  ;;  %v833_v20 = vmul.f32 %v1733_v10, %v1733_v10  ;;  %1066 = vst.msk [vmem:[%s4100_s4 + $0x198] sm:$0xff] %vm676_vm3, %v2353_v17  ;;  %v2366_v24 = vpop.f32.mrb[19].mxu1  ;;  %v714_v28 = vsel %vm676_vm3, %v1733_v10, 0.0 }
 0x107   :  { %v712_v21 = vsel %vm676_vm3, %v439_v14, 0.0  ;;  %v832_v23 = vmul.f32 %v439_v14, %v439_v14  ;;  %1033 = vst.msk [vmem:[%s4100_s4 + $0x90] sm:$0xff] %vm676_vm3, %v439_v14  ;;  %1065 = vst.msk [vmem:[%s4100_s4 + $0x190] sm:$0xff] %vm676_vm3, %v2366_v24 }
 0x108   :  { %v713_v25 = vadd.f32 %v712_v21, %v711_v16  ;;  %v912_v27 = vadd.f32 %v911_v18, %v910_v11  ;;  %v915_v38 = vsel %vm676_vm3, %v833_v20, 0.0 }
 0x109   :  { %v913_v29 = vsel %vm676_vm3, %v832_v23, 0.0  ;;  %v1736_v31 = vpop.f32.mrb[20].mxu0  ;;  %v2379_v37 = vpop.f32.mrb[20].mxu1 }
 0x10a   :  { %v914_v32 = vadd.f32 %v913_v29, %v912_v27  ;;  %1036 = vst.msk [vmem:[%s4100_s4 + $0xa8] sm:$0xff] %vm676_vm3, %v1736_v31  ;;  %v449_v33 = vpop.f32.mrb[21].mxu0  ;;  %v715_v35 = vadd.f32 %v714_v28, %v713_v25  ;;  %v835_v40 = vmul.f32 %v1736_v31, %v1736_v31  ;;  %1068 = vst.msk [vmem:[%s4100_s4 + $0x1a8] sm:$0xff] %vm676_vm3, %v2379_v37  ;;  %v2392_v43 = vpop.f32.mrb[21].mxu1  ;;  %v718_v47 = vsel %vm676_vm3, %v1736_v31, 0.0 }
 0x10b   :  { %v716_v41 = vsel %vm676_vm3, %v449_v33, 0.0  ;;  %v834_v42 = vmul.f32 %v449_v33, %v449_v33  ;;  %1035 = vst.msk [vmem:[%s4100_s4 + $0xa0] sm:$0xff] %vm676_vm3, %v449_v33  ;;  %1067 = vst.msk [vmem:[%s4100_s4 + $0x1a0] sm:$0xff] %vm676_vm3, %v2392_v43 }
 0x10c   :  { %v717_v44 = vadd.f32 %v716_v41, %v715_v35  ;;  %v916_v45 = vadd.f32 %v915_v38, %v914_v32  ;;  %v919_v57 = vsel %vm676_vm3, %v835_v40, 0.0 }
 0x10d   :  { %v917_v49 = vsel %vm676_vm3, %v834_v42, 0.0  ;;  %v1739_v50 = vpop.f32.mrb[22].mxu0  ;;  %v2405_v56 = vpop.f32.mrb[22].mxu1 }
 0x10e   :  { %v918_v51 = vadd.f32 %v917_v49, %v916_v45  ;;  %1038 = vst.msk [vmem:[%s4100_s4 + $0xb8] sm:$0xff] %vm676_vm3, %v1739_v50  ;;  %v459_v54 = vpop.f32.mrb[23].mxu0  ;;  %v719_v55 = vadd.f32 %v718_v47, %v717_v44  ;;  %v837_v58 = vmul.f32 %v1739_v50, %v1739_v50  ;;  %1070 = vst.msk [vmem:[%s4100_s4 + $0x1b8] sm:$0xff] %vm676_vm3, %v2405_v56  ;;  %v2418_v61 = vpop.f32.mrb[23].mxu1  ;;  %v722_v2 = vsel %vm676_vm3, %v1739_v50, 0.0 }
 0x10f   :  { %v720_v59 = vsel %vm676_vm3, %v459_v54, 0.0  ;;  %v836_v60 = vmul.f32 %v459_v54, %v459_v54  ;;  %1037 = vst.msk [vmem:[%s4100_s4 + $0xb0] sm:$0xff] %vm676_vm3, %v459_v54  ;;  %1069 = vst.msk [vmem:[%s4100_s4 + $0x1b0] sm:$0xff] %vm676_vm3, %v2418_v61 }
 0x110   :  { %v721_v0 = vadd.f32 %v720_v59, %v719_v55  ;;  %v920_v1 = vadd.f32 %v919_v57, %v918_v51  ;;  %v923_v11 = vsel %vm676_vm3, %v837_v58, 0.0 }
 0x111   :  { %v921_v4 = vsel %vm676_vm3, %v836_v60, 0.0  ;;  %v1742_v6 = vpop.f32.mrb[24].mxu0  ;;  %v2431_v10 = vpop.f32.mrb[24].mxu1 }
 0x112   :  { %v922_v7 = vadd.f32 %v921_v4, %v920_v1  ;;  %1040 = vst.msk [vmem:[%s4100_s4 + $0xc8] sm:$0xff] %vm676_vm3, %v1742_v6  ;;  %v469_v8 = vpop.f32.mrb[25].mxu0  ;;  %v723_v9 = vadd.f32 %v722_v2, %v721_v0  ;;  %v839_v14 = vmul.f32 %v1742_v6, %v1742_v6  ;;  %1072 = vst.msk [vmem:[%s4100_s4 + $0x1c8] sm:$0xff] %vm676_vm3, %v2431_v10  ;;  %v2444_v20 = vpop.f32.mrb[25].mxu1  ;;  %v726_v25 = vsel %vm676_vm3, %v1742_v6, 0.0 }
 0x113   :  { %v724_v16 = vsel %vm676_vm3, %v469_v8, 0.0  ;;  %v838_v18 = vmul.f32 %v469_v8, %v469_v8  ;;  %1039 = vst.msk [vmem:[%s4100_s4 + $0xc0] sm:$0xff] %vm676_vm3, %v469_v8  ;;  %1071 = vst.msk [vmem:[%s4100_s4 + $0x1c0] sm:$0xff] %vm676_vm3, %v2444_v20 }
 0x114   :  { %v725_v21 = vadd.f32 %v724_v16, %v723_v9  ;;  %v924_v23 = vadd.f32 %v923_v11, %v922_v7  ;;  %v927_v35 = vsel %vm676_vm3, %v839_v14, 0.0  ;;  %v846_v16 = vmul.f32 %v2133_v15, %v2133_v15 }
 0x115   :  { %v925_v27 = vsel %vm676_vm3, %v838_v18, 0.0  ;;  %v1745_v28 = vpop.f32.mrb[26].mxu0  ;;  %v2457_v33 = vpop.f32.mrb[26].mxu1 }
 0x116   :  { %v926_v29 = vadd.f32 %v925_v27, %v924_v23  ;;  %1042 = vst.msk [vmem:[%s4100_s4 + $0xd8] sm:$0xff] %vm676_vm3, %v1745_v28  ;;  %v479_v31 = vpop.f32.mrb[27].mxu0  ;;  %v727_v32 = vadd.f32 %v726_v25, %v725_v21  ;;  %v841_v38 = vmul.f32 %v1745_v28, %v1745_v28  ;;  %1074 = vst.msk [vmem:[%s4100_s4 + $0x1d8] sm:$0xff] %vm676_vm3, %v2457_v33  ;;  %v2470_v42 = vpop.f32.mrb[27].mxu1  ;;  %v730_v47 = vsel %vm676_vm3, %v1745_v28, 0.0 }
 0x117   :  { %v728_v40 = vsel %vm676_vm3, %v479_v31, 0.0  ;;  %v840_v41 = vmul.f32 %v479_v31, %v479_v31  ;;  %1041 = vst.msk [vmem:[%s4100_s4 + $0xd0] sm:$0xff] %vm676_vm3, %v479_v31  ;;  %1073 = vst.msk [vmem:[%s4100_s4 + $0x1d0] sm:$0xff] %vm676_vm3, %v2470_v42 }
 0x118   :  { %v729_v44 = vadd.f32 %v728_v40, %v727_v32  ;;  %v928_v45 = vadd.f32 %v927_v35, %v926_v29  ;;  %v931_v58 = vsel %vm676_vm3, %v841_v38, 0.0  ;;  %v740_v38 = vsel %vm676_vm3, %v2133_v15, 0.0 }
 0x119   :  { %v929_v49 = vsel %vm676_vm3, %v840_v41, 0.0  ;;  %v1748_v50 = vpop.f32.mrb[28].mxu0  ;;  %v2483_v57 = vpop.f32.mrb[28].mxu1  ;;  %v744_v15 = vsel %vm676_vm3, %v2158_v26, 0.0 }
 0x11a   :  { %v930_v51 = vadd.f32 %v929_v49, %v928_v45  ;;  %1044 = vst.msk [vmem:[%s4100_s4 + $0xe8] sm:$0xff] %vm676_vm3, %v1748_v50  ;;  %v489_v54 = vpop.f32.mrb[29].mxu0  ;;  %v731_v55 = vadd.f32 %v730_v47, %v729_v44  ;;  %v843_v59 = vmul.f32 %v1748_v50, %v1748_v50  ;;  %1076 = vst.msk [vmem:[%s4100_s4 + $0x1e8] sm:$0xff] %vm676_vm3, %v2483_v57  ;;  %v2496_v1 = vpop.f32.mrb[29].mxu1  ;;  %v734_v6 = vsel %vm676_vm3, %v1748_v50, 0.0 }
 0x11b   :  { %v732_v60 = vsel %vm676_vm3, %v489_v54, 0.0  ;;  %v842_v0 = vmul.f32 %v489_v54, %v489_v54  ;;  %1043 = vst.msk [vmem:[%s4100_s4 + $0xe0] sm:$0xff] %vm676_vm3, %v489_v54  ;;  %1075 = vst.msk [vmem:[%s4100_s4 + $0x1e0] sm:$0xff] %vm676_vm3, %v2496_v1  ;;  %v847_v45 = vmul.f32 %v2121_v12, %v2121_v12  ;;  %v941_v47 = vsel %vm676_vm3, %v846_v16, 0.0 }
 0x11c   :  { %v733_v2 = vadd.f32 %v732_v60, %v731_v55  ;;  %v932_v4 = vadd.f32 %v931_v58, %v930_v51  ;;  %v935_v21 = vsel %vm676_vm3, %v843_v59, 0.0  ;;  %v848_v49 = vmul.f32 %v2158_v26, %v2158_v26 }
 0x11d   :  { %v933_v7 = vsel %vm676_vm3, %v842_v0, 0.0  ;;  %v1751_v8 = vpop.f32.mrb[30].mxu0  ;;  %v2511_v18 = vpop.f32.mrb[30].mxu1  ;;  %v742_v54 = vsel %vm676_vm3, %v2121_v12, 0.0  ;;  %v943_v59 = vsel %vm676_vm3, %v847_v45, 0.0  ;;  %v849_v60 = vmul.f32 %v2146_v22, %v2146_v22 }
 0x11e   :  { %v934_v9 = vadd.f32 %v933_v7, %v932_v4  ;;  %1046 = vst.msk [vmem:[%s4100_s4 + $0xf8] sm:$0xff] %vm676_vm3, %v1751_v8  ;;  %v499_v11 = vpop.f32.mrb[31].mxu0  ;;  %v735_v14 = vadd.f32 %v734_v6, %v733_v2  ;;  %v845_v23 = vmul.f32 %v1751_v8, %v1751_v8  ;;  %1078 = vst.msk [vmem:[%s4100_s4 + $0x1f8] sm:$0xff] %vm676_vm3, %v2511_v18  ;;  %v2524_v28 = vpop.f32.mrb[31].mxu1  ;;  %v738_v32 = vsel %vm676_vm3, %v1751_v8, 0.0 }
 0x11f   :  { %v736_v25 = vsel %vm676_vm3, %v499_v11, 0.0  ;;  %v844_v27 = vmul.f32 %v499_v11, %v499_v11  ;;  %1045 = vst.msk [vmem:[%s4100_s4 + $0xf0] sm:$0xff] %vm676_vm3, %v499_v11  ;;  %1077 = vst.msk [vmem:[%s4100_s4 + $0x1f0] sm:$0xff] %vm676_vm3, %v2524_v28  ;;  %v945_v0 = vsel %vm676_vm3, %v848_v49, 0.0  ;;  %v850_v2 = vmul.f32 %v2184_v39, %v2184_v39 }
 0x120   :  { %v737_v29 = vadd.f32 %v736_v25, %v735_v14  ;;  %v936_v31 = vadd.f32 %v935_v21, %v934_v9  ;;  %v939_v44 = vsel %vm676_vm3, %v845_v23, 0.0  ;;  %v746_v12 = vsel %vm676_vm3, %v2146_v22, 0.0 }
 0x121   :  { %v937_v35 = vsel %vm676_vm3, %v844_v27, 0.0  ;;  %v748_v26 = vsel %vm676_vm3, %v2184_v39, 0.0  ;;  %v947_v9 = vsel %vm676_vm3, %v849_v60, 0.0  ;;  %v851_v11 = vmul.f32 %v2171_v34, %v2171_v34 }
 0x122   :  { %v739_v40 = vadd.f32 %v738_v32, %v737_v29  ;;  %v938_v41 = vadd.f32 %v937_v35, %v936_v31  ;;  %v949_v14 = vsel %vm676_vm3, %v850_v2, 0.0  ;;  %v852_v16 = vmul.f32 %v2210_v53, %v2210_v53 }
 0x123   :  { %v750_v22 = vsel %vm676_vm3, %v2171_v34, 0.0  ;;  %v752_v39 = vsel %vm676_vm3, %v2210_v53, 0.0  ;;  %v951_v29 = vsel %vm676_vm3, %v851_v11, 0.0  ;;  %v853_v31 = vmul.f32 %v2197_v48, %v2197_v48 }
 0x124   :  { %v940_v50 = vadd.f32 %v939_v44, %v938_v41  ;;  %v741_v51 = vadd.f32 %v740_v38, %v739_v40  ;;  %v953_v32 = vsel %vm676_vm3, %v852_v16, 0.0  ;;  %v854_v35 = vmul.f32 %v2236_v3, %v2236_v3 }
 0x125   :  { %v754_v34 = vsel %vm676_vm3, %v2197_v48, 0.0  ;;  %v756_v53 = vsel %vm676_vm3, %v2236_v3, 0.0  ;;  %v955_v45 = vsel %vm676_vm3, %v853_v31, 0.0  ;;  %v758_v48 = vsel %vm676_vm3, %v2223_v62, 0.0 }
 0x126   :  { %v942_v55 = vadd.f32 %v941_v47, %v940_v50  ;;  %v743_v58 = vadd.f32 %v742_v54, %v741_v51  ;;  %v855_v47 = vmul.f32 %v2223_v62, %v2223_v62  ;;  %v957_v49 = vsel %vm676_vm3, %v854_v35, 0.0 }
 0x127   :  { %v856_v50 = vmul.f32 %v2262_v19, %v2262_v19  ;;  %v760_v3 = vsel %vm676_vm3, %v2262_v19, 0.0  ;;  %v762_v62 = vsel %vm676_vm3, %v2249_v13, 0.0  ;;  %v764_v19 = vsel %vm676_vm3, %v2288_v36, 0.0 }
 0x128   :  { %v745_v4 = vadd.f32 %v744_v15, %v743_v58  ;;  %v944_v6 = vadd.f32 %v943_v59, %v942_v55  ;;  %v959_v58 = vsel %vm676_vm3, %v855_v47, 0.0  ;;  %v857_v59 = vmul.f32 %v2249_v13, %v2249_v13 }
 0x129   :  { %v961_v60 = vsel %vm676_vm3, %v856_v50, 0.0  ;;  %v766_v13 = vsel %vm676_vm3, %v2275_v30, 0.0 }
 0x12a   :  { %v946_v7 = vadd.f32 %v945_v0, %v944_v6  ;;  %v747_v8 = vadd.f32 %v746_v12, %v745_v4  ;;  %v858_v0 = vmul.f32 %v2288_v36, %v2288_v36  ;;  %v768_v36 = vsel %vm676_vm3, %v2314_v52, 0.0 }
 0x12c   :  { %v749_v21 = vadd.f32 %v748_v26, %v747_v8  ;;  %v948_v23 = vadd.f32 %v947_v9, %v946_v7  ;;  %v963_v26 = vsel %vm676_vm3, %v857_v59, 0.0  ;;  %v859_v7 = vmul.f32 %v2275_v30, %v2275_v30 }
 0x12d   :  { %v965_v8 = vsel %vm676_vm3, %v858_v0, 0.0  ;;  %v860_v9 = vmul.f32 %v2314_v52, %v2314_v52  ;;  %v770_v30 = vsel %vm676_vm3, %v2301_v46, 0.0  ;;  %v772_v52 = vsel %vm676_vm3, %v2340_v5, 0.0 }
 0x12e   :  { %v950_v25 = vadd.f32 %v949_v14, %v948_v23  ;;  %v751_v27 = vadd.f32 %v750_v22, %v749_v21  ;;  %v967_v23 = vsel %vm676_vm3, %v859_v7, 0.0  ;;  %v861_v22 = vmul.f32 %v2301_v46, %v2301_v46 }
 0x12f   :  { %v774_v46 = vsel %vm676_vm3, %v2327_v63, 0.0 }
 0x130   :  { %v753_v38 = vadd.f32 %v752_v39, %v751_v27  ;;  %v952_v40 = vadd.f32 %v951_v29, %v950_v25  ;;  %v969_v39 = vsel %vm676_vm3, %v860_v9, 0.0  ;;  %v862_v25 = vmul.f32 %v2340_v5, %v2340_v5 }
 0x131   :  { %v971_v35 = vsel %vm676_vm3, %v861_v22, 0.0  ;;  %v776_v5 = vsel %vm676_vm3, %v2366_v24, 0.0 }
 0x132   :  { %v954_v41 = vadd.f32 %v953_v32, %v952_v40  ;;  %v755_v44 = vadd.f32 %v754_v34, %v753_v38  ;;  %v863_v38 = vmul.f32 %v2327_v63, %v2327_v63  ;;  %v973_v40 = vsel %vm676_vm3, %v862_v25, 0.0 }
 0x133   :  { %v864_v34 = vmul.f32 %v2366_v24, %v2366_v24  ;;  %v778_v63 = vsel %vm676_vm3, %v2353_v17, 0.0  ;;  %v780_v24 = vsel %vm676_vm3, %v2392_v43, 0.0 }
 0x134   :  { %v757_v51 = vadd.f32 %v756_v53, %v755_v44  ;;  %v956_v54 = vadd.f32 %v955_v45, %v954_v41  ;;  %v975_v47 = vsel %vm676_vm3, %v863_v38, 0.0 }
 0x135   :  { %v977_v50 = vsel %vm676_vm3, %v864_v34, 0.0 }
 0x136   :  { %v958_v15 = vadd.f32 %v957_v49, %v956_v54  ;;  %v759_v55 = vadd.f32 %v758_v48, %v757_v51  ;;  %v865_v49 = vmul.f32 %v2353_v17, %v2353_v17  ;;  %v866_v51 = vmul.f32 %v2392_v43, %v2392_v43 }
 0x137   :  { %v782_v17 = vsel %vm676_vm3, %v2379_v37, 0.0  ;;  %v784_v43 = vsel %vm676_vm3, %v2418_v61, 0.0 }
 0x138   :  { %v761_v2 = vadd.f32 %v760_v3, %v759_v55  ;;  %v960_v4 = vadd.f32 %v959_v58, %v958_v15  ;;  %v979_v55 = vsel %vm676_vm3, %v865_v49, 0.0  ;;  %v867_v58 = vmul.f32 %v2379_v37, %v2379_v37 }
 0x139   :  { %v981_v59 = vsel %vm676_vm3, %v866_v51, 0.0  ;;  %v786_v37 = vsel %vm676_vm3, %v2405_v56, 0.0 }
 0x13a   :  { %v962_v6 = vadd.f32 %v961_v60, %v960_v4  ;;  %v763_v12 = vadd.f32 %v762_v62, %v761_v2  ;;  %v868_v60 = vmul.f32 %v2418_v61, %v2418_v61  ;;  %v788_v61 = vsel %vm676_vm3, %v2444_v20, 0.0 }
 0x13c   :  { %v765_v11 = vadd.f32 %v764_v19, %v763_v12  ;;  %v964_v14 = vadd.f32 %v963_v26, %v962_v6  ;;  %v983_v19 = vsel %vm676_vm3, %v867_v58, 0.0  ;;  %v869_v6 = vmul.f32 %v2405_v56, %v2405_v56 }
 0x13d   :  { %v985_v12 = vsel %vm676_vm3, %v868_v60, 0.0  ;;  %v870_v26 = vmul.f32 %v2444_v20, %v2444_v20  ;;  %v790_v56 = vsel %vm676_vm3, %v2431_v10, 0.0  ;;  %v792_v20 = vsel %vm676_vm3, %v2470_v42, 0.0 }
 0x13e   :  { %v966_v16 = vadd.f32 %v965_v8, %v964_v14  ;;  %v767_v21 = vadd.f32 %v766_v13, %v765_v11  ;;  %v987_v14 = vsel %vm676_vm3, %v869_v6, 0.0  ;;  %v871_v13 = vmul.f32 %v2431_v10, %v2431_v10 }
 0x13f   :  { %v794_v10 = vsel %vm676_vm3, %v2457_v33, 0.0 }
 0x140   :  { %v769_v27 = vadd.f32 %v768_v36, %v767_v21  ;;  %v968_v29 = vadd.f32 %v967_v23, %v966_v16  ;;  %v989_v36 = vsel %vm676_vm3, %v870_v26, 0.0  ;;  %v872_v16 = vmul.f32 %v2470_v42, %v2470_v42 }
 0x141   :  { %v991_v25 = vsel %vm676_vm3, %v871_v13, 0.0  ;;  %v796_v42 = vsel %vm676_vm3, %v2496_v1, 0.0 }
 0x142   :  { %v970_v31 = vadd.f32 %v969_v39, %v968_v29  ;;  %v771_v32 = vadd.f32 %v770_v30, %v769_v27  ;;  %v873_v27 = vmul.f32 %v2457_v33, %v2457_v33  ;;  %v993_v29 = vsel %vm676_vm3, %v872_v16, 0.0 }
 0x143   :  { %v874_v30 = vmul.f32 %v2496_v1, %v2496_v1  ;;  %v798_v33 = vsel %vm676_vm3, %v2483_v57, 0.0  ;;  %v800_v1 = vsel %vm676_vm3, %v2524_v28, 0.0 }
 0x144   :  { %v773_v53 = vadd.f32 %v772_v52, %v771_v32  ;;  %v972_v41 = vadd.f32 %v971_v35, %v970_v31  ;;  %v995_v38 = vsel %vm676_vm3, %v873_v27, 0.0  ;;  %v1099_v27 = vld [vmem:[%s4100_s4 + $0x18] sm:$0xff] }
 0x145   :  { %v997_v34 = vsel %vm676_vm3, %v874_v30, 0.0  ;;  %v1101_v30 = vld [vmem:[%s4100_s4 + $0x28] sm:$0xff] }
 0x146   :  { %v974_v44 = vadd.f32 %v973_v40, %v972_v41  ;;  %v775_v45 = vadd.f32 %v774_v46, %v773_v53  ;;  %v875_v40 = vmul.f32 %v2483_v57, %v2483_v57  ;;  %v876_v53 = vmul.f32 %v2524_v28, %v2524_v28 }
 0x148   :  { %v777_v54 = vadd.f32 %v776_v5, %v775_v45  ;;  %v976_v48 = vadd.f32 %v975_v47, %v974_v44  ;;  %v999_v45 = vsel %vm676_vm3, %v875_v40, 0.0  ;;  %v877_v47 = vmul.f32 %v2511_v18, %v2511_v18  ;;  %v1106_v40 = vld [vmem:[%s4100_s4 + $0x50] sm:$0xff] }
 0x149   :  { %v1001_v49 = vsel %vm676_vm3, %v876_v53, 0.0  ;;  %v1108_v53 = vld [vmem:[%s4100_s4 + $0x60] sm:$0xff] }
 0x14a   :  { %v978_v3 = vadd.f32 %v977_v50, %v976_v48  ;;  %v779_v15 = vadd.f32 %v778_v63, %v777_v54  ;;  %v802_v54 = vsel %vm676_vm3, %v2511_v18, 0.0  ;;  %v1003_v57 = vsel %vm676_vm3, %v877_v47, 0.0 }
 0x14c   :  { %v781_v0 = vadd.f32 %v780_v24, %v779_v15  ;;  %v980_v2 = vadd.f32 %v979_v55, %v978_v3 }
 0x14e   :  { %v982_v4 = vadd.f32 %v981_v59, %v980_v2  ;;  %v783_v62 = vadd.f32 %v782_v17, %v781_v0  ;;  %v675_v17 = vld [vmem:[#allocation2] sm:$0x1] }
 0x150   :  { %v785_v7 = vadd.f32 %v784_v43, %v783_v62  ;;  %v984_v8 = vadd.f32 %v983_v19, %v982_v4  ;;  %v813_v62 = vld [vmem:[#allocation3] sm:$0x1] }
 0x152   :  { %v986_v9 = vadd.f32 %v985_v12, %v984_v8  ;;  %v787_v11 = vadd.f32 %v786_v37, %v785_v7 }
 0x154   :  { %v789_v21 = vadd.f32 %v788_v61, %v787_v11  ;;  %v988_v23 = vadd.f32 %v987_v14, %v986_v9  ;;  %v1161_v14 = vlaneseq }
 0x156   :  { %v990_v22 = vadd.f32 %v989_v36, %v988_v23  ;;  %v791_v39 = vadd.f32 %v790_v56, %v789_v21  ;;  %v1089_v36 = vld [vmem:[%s4101_s2] sm:$0x1]  ;;  %v2697_v16 = vshrl.u32 %v1161_v14, 7 }
 0x158   :  { %v793_v52 = vadd.f32 %v792_v20, %v791_v39  ;;  %v992_v31 = vadd.f32 %v991_v25, %v990_v22  ;;  %v4103_v23 = vsub.s32 0, %v2697_v16  ;;  %v2705_v20 = vld [vmem:[%s4102_s3] sm:$0x1]  ;;  %v1097_v39 = vld [vmem:[%s4100_s4 + $0x8] sm:$0xff] }
 0x159   :  { %v1096_v25 = vld [vmem:[%s4100_s4] sm:$0xff] }
 0x15a   :  { %v994_v32 = vadd.f32 %v993_v29, %v992_v31  ;;  %v795_v35 = vadd.f32 %v794_v10, %v793_v52  ;;  %v1098_v29 = vld [vmem:[%s4100_s4 + $0x10] sm:$0xff]  ;;  %v1100_v52 = vld [vmem:[%s4100_s4 + $0x20] sm:$0xff]  ;;  %v1103_v31 = vld [vmem:[%s4100_s4 + $0x38] sm:$0xff] }
 0x15b   :  { %v1102_v10 = vld [vmem:[%s4100_s4 + $0x30] sm:$0xff] }
 0x15c   :  { %v797_v41 = vadd.f32 %v796_v42, %v795_v35  ;;  %v996_v46 = vadd.f32 %v995_v38, %v994_v32  ;;  %v1105_v42 = vld [vmem:[%s4100_s4 + $0x48] sm:$0xff]  ;;  %v1104_v32 = vld [vmem:[%s4100_s4 + $0x40] sm:$0xff]  ;;  %v1107_v35 = vld [vmem:[%s4100_s4 + $0x58] sm:$0xff] }
 0x15d   :  { %v1151_v38 = vld [vmem:[%s4100_s4 + $0x1b8] sm:$0xff] }
 0x15e   :  { %v998_v5 = vadd.f32 %v997_v34, %v996_v46  ;;  %v799_v44 = vadd.f32 %v798_v33, %v797_v41  ;;  %v1109_v34 = vld [vmem:[%s4100_s4 + $0x68] sm:$0xff] }
 0x160   :  { %v801_v50 = vadd.f32 %v800_v1, %v799_v44  ;;  %v1000_v51 = vadd.f32 %v999_v45, %v998_v5  ;;  %v1111_v5 = vld [vmem:[%s4100_s4 + $0x78] sm:$0xff]  ;;  %v1110_v44 = vld [vmem:[%s4100_s4 + $0x70] sm:$0xff]  ;;  %v1113_v45 = vld [vmem:[%s4100_s4 + $0x88] sm:$0xff] }
 0x162   :  { %v803_v48 = vadd.f32 %v802_v54, %v801_v50  ;;  %v1002_v63 = vadd.f32 %v1001_v49, %v1000_v51  ;;  %v1112_v54 = vld [vmem:[%s4100_s4 + $0x80] sm:$0xff] }
 0x164   :  { %v804_v24 = vrot.slane %v803_v48, 4  ;;  %v1004_v28 = vadd.f32 %v1003_v57, %v1002_v63  ;;  %v1114_v63 = vld [vmem:[%s4100_s4 + $0x90] sm:$0xff] }
 0x166   :  { %v805_v3 = vadd.f32 %v804_v24, %v803_v48  ;;  %v1005_v15 = vrot.slane %v1004_v28, 4  ;;  %v1115_v48 = vld [vmem:[%s4100_s4 + $0x98] sm:$0xff] }
 0x168   :  { %v806_v55 = vrot.slane %v805_v3, 2  ;;  %v1006_v58 = vadd.f32 %v1005_v15, %v1004_v28  ;;  %v1117_v15 = vld [vmem:[%s4100_s4 + $0xa8] sm:$0xff] }
 0x16a   :  { %v807_v59 = vadd.f32 %v806_v55, %v805_v3  ;;  %v1007_v60 = vrot.slane %v1006_v58, 2  ;;  %v1116_v55 = vld [vmem:[%s4100_s4 + $0xa0] sm:$0xff] }
 0x16c   :  { %v808_v0 = vrot.slane %v807_v59, 1  ;;  %v1008_v2 = vadd.f32 %v1007_v60, %v1006_v58  ;;  %v1119_v58 = vld [vmem:[%s4100_s4 + $0xb8] sm:$0xff] }
 0x16e   :  { %v809_v43 = vadd.f32 %v808_v0, %v807_v59  ;;  %v1009_v4 = vrot.slane %v1008_v2, 1 }
 0x170   :  { %v810_v19 = vadd.f32 %v809_v43, %v675_v17  ;;  %v1010_v18 = vadd.f32 %v1009_v4, %v1008_v2  ;;  %v1118_v17 = vld [vmem:[%s4100_s4 + $0xb0] sm:$0xff]  ;;  %v1121_v43 = vld [vmem:[%s4100_s4 + $0xc8] sm:$0xff]  ;;  %v1120_v4 = vld [vmem:[%s4100_s4 + $0xc0] sm:$0xff] }
 0x172   :  { %812 = vst.msk [vmem:[#allocation2] sm:$0x1] %vm672_vm2, %v810_v19  ;;  %v1011_v6 = vadd.f32 %v1010_v18, %v813_v62 }
 0x174   :  { %1012 = vst.msk [vmem:[#allocation3] sm:$0x1] %vm672_vm2, %v1011_v6 }
 0x179   :  { %v1082_v12 = vld [vmem:[#allocation2] sm:$0x1] }
 0x17a   :  { %v1083_v26 = vmul.f32 0.001953125, %v1082_v12  ;;  %v1123_v12 = vld [vmem:[%s4100_s4 + $0xd8] sm:$0xff] }
 0x17b   :  { %v1084_v7 = vld [vmem:[#allocation3] sm:$0x1] }
 0x17c   :  { %v1085_v8 = vmul.f32 0.001953125, %v1084_v7  ;;  %v1086_v37 = vmul.f32 %v1083_v26, %v1083_v26  ;;  %v1125_v7 = vld [vmem:[%s4100_s4 + $0xe8] sm:$0xff] }
 0x17e   :  { %v1087_v61 = vsub.f32 %v1085_v8, %v1086_v37  ;;  %v1129_v8 = vld [vmem:[%s4100_s4 + $0x108] sm:$0xff]  ;;  %v1128_v37 = vld [vmem:[%s4100_s4 + $0x100] sm:$0xff] }
 0x180   :  { %v1088_v9 = vmax.f32 %v1087_v61, 0.0  ;;  %v1131_v61 = vld [vmem:[%s4100_s4 + $0x118] sm:$0xff] }
 0x182   :  { %v1090_v11 = vadd.f32 1e-05, %v1088_v9  ;;  %v1130_v9 = vld [vmem:[%s4100_s4 + $0x110] sm:$0xff] }
 0x184   :  { %1815 = vrsqrt.f32 %v1090_v11 }
 0x18e   :  { %v1816_v13 = vpop.eup %1815 }
 0x18f   :  { %v1092_v21 = vmul.f32 %v1816_v13, %v1089_v36 }
 0x191   :  { %v2700_v56 = vmul.f32 %v1092_v21, %v1083_v26  ;;  %v2709_v22 = vrot.slane %v1092_v21, %v4103_v23  ;;  %v1122_v26 = vld [vmem:[%s4100_s4 + $0xd0] sm:$0xff]  ;;  %v1124_v21 = vld [vmem:[%s4100_s4 + $0xe0] sm:$0xff] }
 0x192   :  { %v1150_v23 = vld [vmem:[%s4100_s4 + $0x1b0] sm:$0xff] }
 0x193   :  { %v2756_v41 = vmul.f32 %v2709_v22, %v1096_v25  ;;  %v2759_v46 = vmul.f32 %v2709_v22, %v1097_v39  ;;  %v2762_v33 = vmul.f32 %v2709_v22, %v1098_v29  ;;  %v2765_v1 = vmul.f32 %v2709_v22, %v1099_v27  ;;  %v1127_v39 = vld [vmem:[%s4100_s4 + $0xf8] sm:$0xff]  ;;  %v1126_v25 = vld [vmem:[%s4100_s4 + $0xf0] sm:$0xff]  ;;  %v1133_v27 = vld [vmem:[%s4100_s4 + $0x128] sm:$0xff] }
 0x194   :  { %v2777_v47 = vmul.f32 %v2709_v22, %v1100_v52  ;;  %v2780_v49 = vmul.f32 %v2709_v22, %v1101_v30  ;;  %v2783_v50 = vmul.f32 %v2709_v22, %v1102_v10  ;;  %v2786_v51 = vmul.f32 %v2709_v22, %v1103_v31  ;;  %v1132_v29 = vld [vmem:[%s4100_s4 + $0x120] sm:$0xff]  ;;  %v1135_v30 = vld [vmem:[%s4100_s4 + $0x138] sm:$0xff] }
 0x195   :  { %v2798_v57 = vmul.f32 %v2709_v22, %v1104_v32  ;;  %v2801_v24 = vmul.f32 %v2709_v22, %v1105_v42  ;;  %v2804_v28 = vmul.f32 %v2709_v22, %v1106_v40  ;;  %v2807_v3 = vmul.f32 %v2709_v22, %v1107_v35  ;;  %v1134_v32 = vld [vmem:[%s4100_s4 + $0x130] sm:$0xff]  ;;  %v1137_v35 = vld [vmem:[%s4100_s4 + $0x148] sm:$0xff]  ;;  %v1136_v40 = vld [vmem:[%s4100_s4 + $0x140] sm:$0xff] }
 0x196   :  { %v2819_v59 = vmul.f32 %v2709_v22, %v1108_v53  ;;  %v2822_v60 = vmul.f32 %v2709_v22, %v1109_v34  ;;  %v2825_v0 = vmul.f32 %v2709_v22, %v1110_v44  ;;  %v2828_v2 = vmul.f32 %v2709_v22, %v1111_v5 }
 0x197   :  { %v2840_v62 = vmul.f32 %v2709_v22, %v1112_v54  ;;  %v2843_v19 = vmul.f32 %v2709_v22, %v1113_v45  ;;  %v2846_v18 = vmul.f32 %v2709_v22, %v1114_v63  ;;  %v2849_v6 = vmul.f32 %v2709_v22, %v1115_v48  ;;  %v1139_v45 = vld [vmem:[%s4100_s4 + $0x158] sm:$0xff]  ;;  %v1138_v54 = vld [vmem:[%s4100_s4 + $0x150] sm:$0xff]  ;;  %v1141_v48 = vld [vmem:[%s4100_s4 + $0x168] sm:$0xff] }
 0x198   :  { %v2873_v11 = vmul.f32 %v2709_v22, %v1116_v55  ;;  %v2876_v14 = vmul.f32 %v2709_v22, %v1117_v15  ;;  %v2879_v13 = vmul.f32 %v2709_v22, %v1118_v17  ;;  %v2882_v36 = vmul.f32 %v2709_v22, %v1119_v58  ;;  %v1140_v17 = vld [vmem:[%s4100_s4 + $0x160] sm:$0xff] }
 0x199   :  { %v2903_v52 = vmul.f32 %v2709_v22, %v1120_v4  ;;  %v2906_v31 = vmul.f32 %v2709_v22, %v1121_v43  ;;  %v2909_v10 = vmul.f32 %v2709_v22, %v1122_v26  ;;  %v2912_v42 = vmul.f32 %v2709_v22, %v1123_v12  ;;  %v1143_v43 = vld [vmem:[%s4100_s4 + $0x178] sm:$0xff]  ;;  %v1142_v4 = vld [vmem:[%s4100_s4 + $0x170] sm:$0xff] }
 0x19a   :  { %v2924_v34 = vmul.f32 %v2709_v22, %v1124_v21  ;;  %v2927_v53 = vmul.f32 %v2709_v22, %v1125_v7  ;;  %v2930_v5 = vmul.f32 %v2709_v22, %v1126_v25  ;;  %v2933_v44 = vmul.f32 %v2709_v22, %v1127_v39 }
 0x19b   :  { %v2945_v63 = vmul.f32 %v2709_v22, %v1128_v37  ;;  %v2948_v15 = vmul.f32 %v2709_v22, %v1129_v8  ;;  %v2951_v55 = vmul.f32 %v2709_v22, %v1130_v9  ;;  %v2954_v58 = vmul.f32 %v2709_v22, %v1131_v61  ;;  %v1145_v37 = vld [vmem:[%s4100_s4 + $0x188] sm:$0xff]  ;;  %v1144_v61 = vld [vmem:[%s4100_s4 + $0x180] sm:$0xff]  ;;  %v1147_v9 = vld [vmem:[%s4100_s4 + $0x198] sm:$0xff] }
 0x19c   :  { %v2966_v12 = vmul.f32 %v2709_v22, %v1132_v29  ;;  %v2969_v26 = vmul.f32 %v2709_v22, %v1133_v27  ;;  %v2972_v7 = vmul.f32 %v2709_v22, %v1134_v32  ;;  %v2975_v8 = vmul.f32 %v2709_v22, %v1135_v30  ;;  %v1146_v29 = vld [vmem:[%s4100_s4 + $0x190] sm:$0xff]  ;;  %v1149_v30 = vld [vmem:[%s4100_s4 + $0x1a8] sm:$0xff]  ;;  %v1148_v32 = vld [vmem:[%s4100_s4 + $0x1a0] sm:$0xff] }
 0x19d   :  { %v2987_v21 = vmul.f32 %v2709_v22, %v1136_v40  ;;  %v2990_v39 = vmul.f32 %v2709_v22, %v1137_v35  ;;  %v2993_v25 = vmul.f32 %v2709_v22, %v1138_v54  ;;  %v2996_v27 = vmul.f32 %v2709_v22, %v1139_v45 }
 0x19e   :  { %v3008_v35 = vmul.f32 %v2709_v22, %v1140_v17  ;;  %v3011_v40 = vmul.f32 %v2709_v22, %v1141_v48  ;;  %v3014_v45 = vmul.f32 %v2709_v22, %v1142_v4  ;;  %v3017_v54 = vmul.f32 %v2709_v22, %v1143_v43  ;;  %v1153_v17 = vld [vmem:[%s4100_s4 + $0x1c8] sm:$0xff] }
 0x19f   :  { %v3029_v48 = vmul.f32 %v2709_v22, %v1144_v61  ;;  %v3032_v4 = vmul.f32 %v2709_v22, %v1145_v37  ;;  %v3035_v43 = vmul.f32 %v2709_v22, %v1146_v29  ;;  %v1155_v61 = vld [vmem:[%s4100_s4 + $0x1d8] sm:$0xff]  ;;  %v1154_v37 = vld [vmem:[%s4100_s4 + $0x1d0] sm:$0xff]  ;;  %v3054_v29 = vmul.f32 %v2709_v22, %v1147_v9 }
 0x1a0   :  { %4127 = vst [vmem:[#allocation4_spill] sm:$0xff] %v3008_v35  ;;  %4128 = vst [vmem:[#allocation5_spill] sm:$0xff] %v3011_v40  ;;  %v1152_v35 = vld [vmem:[%s4100_s4 + $0x1c0] sm:$0xff]  ;;  %v1158_v9 = vld [vmem:[%s4100_s4 + $0x1f0] sm:$0xff] }
 0x1a1   :  { %4129 = vst [vmem:[#allocation6_spill] sm:$0xff] %v3014_v45  ;;  %4130 = vst [vmem:[#allocation7_spill] sm:$0xff] %v3017_v54  ;;  %v4131_v54 = vsub.s32 0, %v2697_v16  ;;  %v4132_v45 = vsub.f32 %v2705_v20, %v2700_v56  ;;  %v3057_v16 = vmul.f32 %v2709_v22, %v1148_v32  ;;  %v3060_v56 = vmul.f32 %v2709_v22, %v1149_v30 }
 0x1a2   :  { %4133 = vst [vmem:[#allocation8_spill] sm:$0xff] %v3054_v29  ;;  %v3063_v20 = vmul.f32 %v2709_v22, %v1150_v23  ;;  %v3075_v32 = vmul.f32 %v2709_v22, %v1151_v38  ;;  %v3078_v30 = vmul.f32 %v2709_v22, %v1152_v35  ;;  %v3081_v23 = vmul.f32 %v2709_v22, %v1153_v17 }
 0x1a3   :  { %v3042_v40 = vrot.slane %v4132_v45, %v4131_v54  ;;  %4134 = vst [vmem:[#allocation9_spill] sm:$0xff] %v3057_v16  ;;  %4135 = vst [vmem:[#allocation10_spill] sm:$0xff] %v3060_v56  ;;  %v1157_v45 = vld [vmem:[%s4100_s4 + $0x1e8] sm:$0xff]  ;;  %v1156_v54 = vld [vmem:[%s4100_s4 + $0x1e0] sm:$0xff]  ;;  %v3090_v16 = vmul.f32 %v2709_v22, %v1155_v61  ;;  %v3099_v35 = vmul.f32 %v2709_v22, %v1158_v9 }
 0x1a4   :  { %4136 = vst [vmem:[#allocation11_spill] sm:$0xff] %v3063_v20  ;;  %v3084_v20 = vmul.f32 %v2709_v22, %v1154_v37  ;;  %v1159_v56 = vld [vmem:[%s4100_s4 + $0x1f8] sm:$0xff]  ;;  %v3093_v29 = vmul.f32 %v2709_v22, %v1156_v54  ;;  %v3096_v38 = vmul.f32 %v2709_v22, %v1157_v45 }
 0x1a5   :  { %v3102_v17 = vmul.f32 %v2709_v22, %v1159_v56  ;;  %v3106_v37 = vadd.f32 %v3042_v40, %v2756_v41  ;;  %v3110_v61 = vadd.f32 %v3042_v40, %v2759_v46  ;;  %v3114_v54 = vadd.f32 %v3042_v40, %v2762_v33 }
 0x1a6   :  { %v3118_v45 = vadd.f32 %v3042_v40, %v2765_v1  ;;  %v3122_v22 = vadd.f32 %v3042_v40, %v2777_v47  ;;  %v3126_v41 = vadd.f32 %v3042_v40, %v2780_v49  ;;  %v3130_v46 = vadd.f32 %v3042_v40, %v2783_v50 }
 0x1a7   :  { %v3134_v33 = vadd.f32 %v3042_v40, %v2786_v51  ;;  %v3138_v1 = vadd.f32 %v3042_v40, %v2798_v57  ;;  %v3142_v47 = vadd.f32 %v3042_v40, %v2801_v24  ;;  %v3146_v49 = vadd.f32 %v3042_v40, %v2804_v28  ;;  %v4139_v56 = vld [vmem:[#allocation4_spill] sm:$0xff]  ;;  %v4140_v9 = vld [vmem:[#allocation5_spill] sm:$0xff] }
 0x1a8   :  { %v3150_v50 = vadd.f32 %v3042_v40, %v2807_v3  ;;  %v3154_v51 = vadd.f32 %v3042_v40, %v2819_v59  ;;  %v3158_v57 = vadd.f32 %v3042_v40, %v2822_v60  ;;  %v3162_v24 = vadd.f32 %v3042_v40, %v2825_v0 }
 0x1a9   :  { %v3166_v28 = vadd.f32 %v3042_v40, %v2828_v2  ;;  %v3170_v3 = vadd.f32 %v3042_v40, %v2840_v62  ;;  %v3174_v59 = vadd.f32 %v3042_v40, %v2843_v19  ;;  %v3178_v60 = vadd.f32 %v3042_v40, %v2846_v18 }
 0x1aa   :  { %v3182_v0 = vadd.f32 %v3042_v40, %v2849_v6  ;;  %v3186_v2 = vadd.f32 %v3042_v40, %v2873_v11  ;;  %v3190_v62 = vadd.f32 %v3042_v40, %v2876_v14  ;;  %v3194_v19 = vadd.f32 %v3042_v40, %v2879_v13 }
 0x1ab   :  { %v3198_v18 = vadd.f32 %v3042_v40, %v2882_v36  ;;  %v3202_v6 = vadd.f32 %v3042_v40, %v2903_v52  ;;  %v3206_v11 = vadd.f32 %v3042_v40, %v2906_v31  ;;  %v3210_v14 = vadd.f32 %v3042_v40, %v2909_v10 }
 0x1ac   :  { %v3214_v13 = vadd.f32 %v3042_v40, %v2912_v42  ;;  %v3218_v36 = vadd.f32 %v3042_v40, %v2924_v34  ;;  %v3222_v52 = vadd.f32 %v3042_v40, %v2927_v53  ;;  %v3226_v31 = vadd.f32 %v3042_v40, %v2930_v5 }
 0x1ad   :  { %v3230_v10 = vadd.f32 %v3042_v40, %v2933_v44  ;;  %v3234_v42 = vadd.f32 %v3042_v40, %v2945_v63  ;;  %v3238_v34 = vadd.f32 %v3042_v40, %v2948_v15  ;;  %v3242_v53 = vadd.f32 %v3042_v40, %v2951_v55 }
 0x1ae   :  { %v3246_v5 = vadd.f32 %v3042_v40, %v2954_v58  ;;  %v3250_v44 = vadd.f32 %v3042_v40, %v2966_v12  ;;  %v3254_v63 = vadd.f32 %v3042_v40, %v2969_v26  ;;  %v3258_v15 = vadd.f32 %v3042_v40, %v2972_v7 }
 0x1af   :  { %v3262_v55 = vadd.f32 %v3042_v40, %v2975_v8  ;;  %v3266_v58 = vadd.f32 %v3042_v40, %v2987_v21  ;;  %v3270_v12 = vadd.f32 %v3042_v40, %v2990_v39  ;;  %v3274_v26 = vadd.f32 %v3042_v40, %v2993_v25 }
 0x1b0   :  { %v3278_v7 = vadd.f32 %v3042_v40, %v2996_v27  ;;  %v3282_v8 = vadd.f32 %v3042_v40, %v4139_v56  ;;  %v3286_v21 = vadd.f32 %v3042_v40, %v4140_v9  ;;  %v3298_v27 = vadd.f32 %v3042_v40, %v3029_v48 }
 0x1b1   :  { %4137 = vst [vmem:[#allocation12_spill] sm:$0xff] %v3266_v58  ;;  %4138 = vst [vmem:[#allocation13_spill] sm:$0xff] %v3270_v12  ;;  %v4142_v58 = vld [vmem:[#allocation6_spill] sm:$0xff]  ;;  %v4144_v12 = vld [vmem:[#allocation7_spill] sm:$0xff]  ;;  %v3302_v56 = vadd.f32 %v3042_v40, %v3032_v4  ;;  %v3306_v9 = vadd.f32 %v3042_v40, %v3035_v43  ;;  %v3326_v43 = vadd.f32 %v3042_v40, %v3075_v32  ;;  %vm1300_vm4 = vcmp.ge.f32.partialorder %v3106_v37, 0.0 }
 0x1b2   :  { %4141 = vst [vmem:[#allocation4_spill] sm:$0xff] %v3286_v21  ;;  %v3290_v39 = vadd.f32 %v3042_v40, %v4142_v58  ;;  %v3294_v25 = vadd.f32 %v3042_v40, %v4144_v12  ;;  %4146 = vst [vmem:[#allocation7_spill] sm:$0xff] %v3298_v27  ;;  %v4148_v21 = vld [vmem:[#allocation8_spill] sm:$0xff]  ;;  %v4152_v27 = vld [vmem:[#allocation11_spill] sm:$0xff]  ;;  %v3346_v32 = vadd.f32 %v3042_v40, %v3093_v29  ;;  %vm1301_vm5 = vcmp.ge.f32.partialorder %v3110_v61, 0.0 }
 0x1b3   :  { %4147 = vst [vmem:[#allocation14_spill] sm:$0xff] %v3302_v56  ;;  %v3310_v58 = vadd.f32 %v3042_v40, %v4148_v21  ;;  %v3322_v4 = vadd.f32 %v3042_v40, %v4152_v27  ;;  %v3330_v21 = vadd.f32 %v3042_v40, %v3078_v30  ;;  %v3342_v27 = vadd.f32 %v3042_v40, %v3090_v16 }
 0x1b4   :  { %4143 = vst [vmem:[#allocation5_spill] sm:$0xff] %v3290_v39  ;;  %4145 = vst [vmem:[#allocation6_spill] sm:$0xff] %v3294_v25  ;;  %v4149_v39 = vld [vmem:[#allocation9_spill] sm:$0xff]  ;;  %v4150_v25 = vld [vmem:[#allocation10_spill] sm:$0xff]  ;;  %v3350_v30 = vadd.f32 %v3042_v40, %v3096_v38  ;;  %vm1302_vm6 = vcmp.ge.f32.partialorder %v3114_v54, 0.0  ;;  %vm1303_vm7 = vcmp.ge.f32.partialorder %v3118_v45, 0.0  ;;  %v3363_v29 = vadd.f32 %v3042_v40, %v3099_v35 }
 0x1b5   :  { %v3314_v12 = vadd.f32 %v3042_v40, %v4149_v39  ;;  %v3318_v48 = vadd.f32 %v3042_v40, %v4150_v25  ;;  %4153 = vst [vmem:[#allocation9_spill] sm:$0xff] %v3322_v4  ;;  %4154 = vst [vmem:[#allocation10_spill] sm:$0xff] %v3326_v43  ;;  %v3334_v39 = vadd.f32 %v3042_v40, %v3081_v23  ;;  %vm1304_vm8 = vcmp.ge.f32.partialorder %v3122_v22, 0.0 }
 0x1b6   :  { %4155 = vst [vmem:[#allocation11_spill] sm:$0xff] %v3330_v21  ;;  %v3338_v25 = vadd.f32 %v3042_v40, %v3084_v20  ;;  %4158 = vst [vmem:[#allocation17_spill] sm:$0xff] %v3342_v27  ;;  %vm1305_vm9 = vcmp.ge.f32.partialorder %v3126_v41, 0.0  ;;  %vm1306_vm10 = vcmp.ge.f32.partialorder %v3130_v46, 0.0  ;;  %vm1307_vm11 = vcmp.ge.f32.partialorder %v3134_v33, 0.0 }
 0x1b7   :  { %4151 = vst [vmem:[#allocation8_spill] sm:$0xff] %v3318_v48  ;;  %4156 = vst [vmem:[#allocation15_spill] sm:$0xff] %v3334_v39  ;;  %vm1308_vm12 = vcmp.ge.f32.partialorder %v3138_v1, 0.0  ;;  %vm1309_vm13 = vcmp.ge.f32.partialorder %v3142_v47, 0.0  ;;  %v1364_v16 = vmul.f32 0.01, %v3106_v37  ;;  %v3371_v38 = vadd.f32 %v3042_v40, %v3102_v17 }
 0x1b8   :  { %4157 = vst [vmem:[#allocation16_spill] sm:$0xff] %v3338_v25  ;;  %4159 = vst [vmem:[#allocation18_spill] sm:$0xff] %v3346_v32  ;;  %v1365_v20 = vmul.f32 0.01, %v3110_v61  ;;  %v1366_v23 = vmul.f32 0.01, %v3114_v54 }
 0x1b9   :  { %4160 = vst [vmem:[#allocation19_spill] sm:$0xff] %v3350_v30  ;;  %4161 = vst [vmem:[#allocation20_spill] sm:$0xff] %v3363_v29  ;;  %vm1310_vm14 = vcmp.ge.f32.partialorder %v3146_v49, 0.0  ;;  %v1367_v30 = vmul.f32 0.01, %v3118_v45  ;;  %vm1311_vm15 = vcmp.ge.f32.partialorder %v3150_v50, 0.0  ;;  %v1428_v40 = vsel %vm1300_vm4, %v3106_v37, %v1364_v16 }
 0x1ba   :  { %4162 = vst [vmem:[#allocation21_spill] sm:$0xff] %v3371_v38  ;;  %v1368_v32 = vmul.f32 0.01, %v3122_v22  ;;  %v1369_v35 = vmul.f32 0.01, %v3126_v41  ;;  %vm1312_vm0 = vcmp.ge.f32.partialorder %v3154_v51, 0.0  ;;  %v1429_v21 = vsel %vm1301_vm5, %v3110_v61, %v1365_v20 }
 0x1bb   :  { %v1370_v29 = vmul.f32 0.01, %v3130_v46  ;;  %v1371_v27 = vmul.f32 0.01, %v3134_v33  ;;  %v1372_v25 = vmul.f32 0.01, %v3138_v1  ;;  %v1430_v61 = vsel %vm1302_vm6, %v3114_v54, %v1366_v23 }
 0x1bc   :  { %v1373_v17 = vmul.f32 0.01, %v3142_v47  ;;  %v3387_v38 = vmul.f32 0.01, %v3146_v49  ;;  %v3390_v39 = vmul.f32 0.01, %v3150_v50  ;;  %v1431_v54 = vsel %vm1303_vm7, %v3118_v45, %v1367_v30 }
 0x1bd   :  { %1492 = vst.msk [vmem:[%s4100_s4] sm:$0xff] %vm676_vm3, %v1428_v40  ;;  %vm1313_vm1 = vcmp.ge.f32.partialorder %v3158_v57, 0.0  ;;  %v3401_v37 = vmul.f32 0.01, %v3154_v51  ;;  %v3404_v16 = vmul.f32 0.01, %v3158_v57  ;;  %v1432_v45 = vsel %vm1304_vm8, %v3122_v22, %v1368_v32 }
 0x1be   :  { %v3407_v43 = vmul.f32 0.01, %v3162_v24  ;;  %1493 = vst.msk [vmem:[%s4100_s4 + $0x8] sm:$0xff] %vm676_vm3, %v1429_v21  ;;  %vm1314_vm2 = vcmp.ge.f32.partialorder %v3162_v24, 0.0  ;;  %v3418_v20 = vmul.f32 0.01, %v3166_v28  ;;  %v1433_v22 = vsel %vm1305_vm9, %v3126_v41, %v1369_v35 }
 0x1bf   :  { %v3421_v40 = vmul.f32 0.01, %v3170_v3  ;;  %v3424_v4 = vmul.f32 0.01, %v3174_v59  ;;  %1494 = vst.msk [vmem:[%s4100_s4 + $0x10] sm:$0xff] %vm676_vm3, %v1430_v61  ;;  %vm1315_vm4 = vcmp.ge.f32.partialorder %v3166_v28, 0.0  ;;  %v1434_v41 = vsel %vm1306_vm10, %v3130_v46, %v1370_v29 }
 0x1c0   :  { %v3435_v21 = vmul.f32 0.01, %v3178_v60  ;;  %v3438_v23 = vmul.f32 0.01, %v3182_v0  ;;  %1495 = vst.msk [vmem:[%s4100_s4 + $0x18] sm:$0xff] %vm676_vm3, %v1431_v54  ;;  %vm1316_vm5 = vcmp.ge.f32.partialorder %v3170_v3, 0.0  ;;  %v1435_v46 = vsel %vm1307_vm11, %v3134_v33, %v1371_v27 }
 0x1c1   :  { %4163 = vst [vmem:[#allocation22_spill] sm:$0xff] %v3421_v40  ;;  %v3441_v40 = vmul.f32 0.01, %v3186_v2  ;;  %v3452_v30 = vmul.f32 0.01, %v3190_v62  ;;  %1496 = vst.msk [vmem:[%s4100_s4 + $0x20] sm:$0xff] %vm676_vm3, %v1432_v45  ;;  %v1436_v33 = vsel %vm1308_vm12, %v3138_v1, %v1372_v25  ;;  %v1437_v25 = vsel %vm1309_vm13, %v3142_v47, %v1373_v17 }
 0x1c2   :  { %4164 = vst [vmem:[#allocation23_spill] sm:$0xff] %v3438_v23  ;;  %v3455_v61 = vmul.f32 0.01, %v3194_v19  ;;  %v3458_v23 = vmul.f32 0.01, %v3198_v18  ;;  %vm1317_vm6 = vcmp.ge.f32.partialorder %v3174_v59, 0.0  ;;  %v1438_v17 = vsel %vm1310_vm14, %v3146_v49, %v3387_v38 }
 0x1c3   :  { %v3469_v32 = vmul.f32 0.01, %v3202_v6  ;;  %v3472_v54 = vmul.f32 0.01, %v3206_v11  ;;  %1497 = vst.msk [vmem:[%s4100_s4 + $0x28] sm:$0xff] %vm676_vm3, %v1433_v22  ;;  %vm1318_vm7 = vcmp.ge.f32.partialorder %v3178_v60, 0.0 }
 0x1c4   :  { %4165 = vst [vmem:[#allocation24_spill] sm:$0xff] %v3455_v61  ;;  %v3475_v61 = vmul.f32 0.01, %v3210_v14  ;;  %v3486_v35 = vmul.f32 0.01, %v3214_v13  ;;  %1498 = vst.msk [vmem:[%s4100_s4 + $0x30] sm:$0xff] %vm676_vm3, %v1434_v41 }
 0x1c5   :  { %4166 = vst [vmem:[#allocation25_spill] sm:$0xff] %v3472_v54  ;;  %v3489_v45 = vmul.f32 0.01, %v3218_v36  ;;  %v3492_v54 = vmul.f32 0.01, %v3222_v52  ;;  %1499 = vst.msk [vmem:[%s4100_s4 + $0x38] sm:$0xff] %vm676_vm3, %v1435_v46 }
 0x1c6   :  { %v3505_v29 = vmul.f32 0.01, %v3226_v31  ;;  %v3508_v22 = vmul.f32 0.01, %v3230_v10  ;;  %vm1322_vm11 = vcmp.ge.f32.partialorder %v3194_v19, 0.0  ;;  %1500 = vst.msk [vmem:[%s4100_s4 + $0x40] sm:$0xff] %vm676_vm3, %v1436_v33 }
 0x1c7   :  { %4167 = vst [vmem:[#allocation26_spill] sm:$0xff] %v3492_v54  ;;  %v3511_v54 = vmul.f32 0.01, %v3234_v42  ;;  %v3525_v27 = vmul.f32 0.01, %v3238_v34  ;;  %vm1326_vm12 = vcmp.ge.f32.partialorder %v3210_v14, 0.0 }
 0x1c8   :  { %v3528_v41 = vmul.f32 0.01, %v3242_v53  ;;  %v3531_v1 = vmul.f32 0.01, %v3246_v5  ;;  %v3545_v46 = vmul.f32 0.01, %v3250_v44 }
 0x1c9   :  { %v3551_v47 = vmul.f32 0.01, %v3258_v15  ;;  %1501 = vst.msk [vmem:[%s4100_s4 + $0x48] sm:$0xff] %vm676_vm3, %v1437_v25  ;;  %vm1330_vm13 = vcmp.ge.f32.partialorder %v3226_v31, 0.0  ;;  %v3566_v33 = vmul.f32 0.01, %v3262_v55  ;;  %v1439_v25 = vsel %vm1311_vm15, %v3150_v50, %v3390_v39 }
 0x1ca   :  { %4168 = vst [vmem:[#allocation27_spill] sm:$0xff] %v3531_v1  ;;  %v3548_v1 = vmul.f32 0.01, %v3254_v63  ;;  %v4173_v49 = vld [vmem:[#allocation13_spill] sm:$0xff]  ;;  %1502 = vst.msk [vmem:[%s4100_s4 + $0x50] sm:$0xff] %vm676_vm3, %v1438_v17  ;;  %vm1334_vm14 = vcmp.ge.f32.partialorder %v3242_v53, 0.0  ;;  %v1440_v39 = vsel %vm1312_vm0, %v3154_v51, %v3401_v37 }
 0x1cb   :  { %4170 = vst [vmem:[#allocation29_spill] sm:$0xff] %v3551_v47  ;;  %v4171_v47 = vld [vmem:[#allocation12_spill] sm:$0xff]  ;;  %v3572_v38 = vmul.f32 0.01, %v4173_v49  ;;  %v3593_v50 = vmul.f32 0.01, %v3282_v8 }
 0x1cc   :  { %4169 = vst [vmem:[#allocation28_spill] sm:$0xff] %v3548_v1  ;;  %v3569_v1 = vmul.f32 0.01, %v4171_v47  ;;  %1503 = vst.msk [vmem:[%s4100_s4 + $0x58] sm:$0xff] %vm676_vm3, %v1439_v25  ;;  %vm1338_vm15 = vcmp.ge.f32.partialorder %v3258_v15, 0.0  ;;  %v4178_v17 = vld [vmem:[#allocation4_spill] sm:$0xff]  ;;  %v1441_v25 = vsel %vm1313_vm1, %v3158_v57, %v3404_v16  ;;  %v1442_v16 = vsel %vm1314_vm2, %v3162_v24, %v3407_v43 }
 0x1cd   :  { %4174 = vst [vmem:[#allocation13_spill] sm:$0xff] %v3572_v38  ;;  %v3587_v38 = vmul.f32 0.01, %v3274_v26  ;;  %4177 = vst [vmem:[#allocation32_spill] sm:$0xff] %v3593_v50  ;;  %v3608_v50 = vmul.f32 0.01, %v4178_v17  ;;  %v1443_v43 = vsel %vm1315_vm4, %v3166_v28, %v3418_v20 }
 0x1ce   :  { %4172 = vst [vmem:[#allocation12_spill] sm:$0xff] %v3569_v1  ;;  %v3590_v1 = vmul.f32 0.01, %v3278_v7  ;;  %v4182_v51 = vld [vmem:[#allocation6_spill] sm:$0xff]  ;;  %1504 = vst.msk [vmem:[%s4100_s4 + $0x60] sm:$0xff] %vm676_vm3, %v1440_v39  ;;  %vm1342_vm0 = vcmp.ge.f32.partialorder %v3274_v26, 0.0 }
 0x1cf   :  { %4175 = vst [vmem:[#allocation30_spill] sm:$0xff] %v3587_v38  ;;  %4179 = vst [vmem:[#allocation4_spill] sm:$0xff] %v3608_v50  ;;  %v3614_v37 = vmul.f32 0.01, %v4182_v51  ;;  %v3632_v50 = vmul.f32 0.01, %v3302_v56 }
 0x1d0   :  { %4176 = vst [vmem:[#allocation31_spill] sm:$0xff] %v3590_v1  ;;  %v4180_v1 = vld [vmem:[#allocation5_spill] sm:$0xff]  ;;  %v3635_v57 = vmul.f32 0.01, %v3306_v9  ;;  %1505 = vst.msk [vmem:[%s4100_s4 + $0x68] sm:$0xff] %vm676_vm3, %v1441_v25  ;;  %vm1350_vm2 = vcmp.ge.f32.partialorder %v3306_v9, 0.0 }
 0x1d1   :  { %v3611_v38 = vmul.f32 0.01, %v4180_v1  ;;  %4183 = vst [vmem:[#allocation6_spill] sm:$0xff] %v3614_v37  ;;  %vm1346_vm1 = vcmp.ge.f32.partialorder %v4180_v1, 0.0  ;;  %v3650_v39 = vmul.f32 0.01, %v3310_v58 }
 0x1d2   :  { %v3656_v24 = vmul.f32 0.01, %v3318_v48  ;;  %1506 = vst.msk [vmem:[%s4100_s4 + $0x70] sm:$0xff] %vm676_vm3, %v1442_v16  ;;  %v4189_v25 = vld [vmem:[#allocation9_spill] sm:$0xff]  ;;  %v4193_v28 = vld [vmem:[#allocation11_spill] sm:$0xff]  ;;  %v4195_v56 = vld [vmem:[#allocation22_spill] sm:$0xff] }
 0x1d3   :  { %4181 = vst [vmem:[#allocation5_spill] sm:$0xff] %v3611_v38  ;;  %v4184_v38 = vld [vmem:[#allocation7_spill] sm:$0xff]  ;;  %4186 = vst [vmem:[#allocation33_spill] sm:$0xff] %v3650_v39  ;;  %v3677_v20 = vmul.f32 0.01, %v4193_v28  ;;  %v1444_v16 = vsel %vm1316_vm5, %v3170_v3, %v4195_v56  ;;  %vm1354_vm4 = vcmp.ge.f32.partialorder %v4189_v25, 0.0 }
 0x1d4   :  { %v3629_v37 = vmul.f32 0.01, %v4184_v38  ;;  %4185 = vst [vmem:[#allocation7_spill] sm:$0xff] %v3635_v57  ;;  %v3653_v57 = vmul.f32 0.01, %v3314_v12  ;;  %4188 = vst [vmem:[#allocation35_spill] sm:$0xff] %v3656_v24 }
 0x1d5   :  { %v3671_v24 = vmul.f32 0.01, %v4189_v25  ;;  %4194 = vst [vmem:[#allocation11_spill] sm:$0xff] %v3677_v20  ;;  %1507 = vst.msk [vmem:[%s4100_s4 + $0x78] sm:$0xff] %vm676_vm3, %v1443_v43  ;;  %v4200_v3 = vld [vmem:[#allocation17_spill] sm:$0xff]  ;;  %v1445_v43 = vsel %vm1317_vm6, %v3174_v59, %v3424_v4  ;;  %v4205_v59 = vld [vmem:[#allocation20_spill] sm:$0xff] }
 0x1d6   :  { %4187 = vst [vmem:[#allocation34_spill] sm:$0xff] %v3653_v57  ;;  %v4191_v57 = vld [vmem:[#allocation10_spill] sm:$0xff]  ;;  %v3698_v56 = vmul.f32 0.01, %v4200_v3  ;;  %1508 = vst.msk [vmem:[%s4100_s4 + $0x80] sm:$0xff] %vm676_vm3, %v1444_v16  ;;  %v1446_v16 = vsel %vm1318_vm7, %v3178_v60, %v3435_v21  ;;  %vm1362_vm6 = vcmp.ge.f32.partialorder %v4205_v59, 0.0 }
 0x1d7   :  { %4190 = vst [vmem:[#allocation9_spill] sm:$0xff] %v3671_v24  ;;  %v3674_v39 = vmul.f32 0.01, %v4191_v57  ;;  %v4198_v24 = vld [vmem:[#allocation16_spill] sm:$0xff]  ;;  %v3719_v4 = vmul.f32 0.01, %v4205_v59 }
 0x1d8   :  { %v3695_v48 = vmul.f32 0.01, %v4198_v24  ;;  %4201 = vst [vmem:[#allocation17_spill] sm:$0xff] %v3698_v56  ;;  %vm1358_vm5 = vcmp.ge.f32.partialorder %v4198_v24, 0.0  ;;  %1509 = vst.msk [vmem:[%s4100_s4 + $0x88] sm:$0xff] %vm676_vm3, %v1445_v43  ;;  %vm4209_vm9 = vcmp.ge.f32.partialorder %v3182_v0, 0.0 }
 0x1d9   :  { %4192 = vst [vmem:[#allocation10_spill] sm:$0xff] %v3674_v39  ;;  %v4196_v39 = vld [vmem:[#allocation15_spill] sm:$0xff]  ;;  %4206 = vst [vmem:[#allocation20_spill] sm:$0xff] %v3719_v4  ;;  %vm4210_vm7 = vcmp.ge.f32.partialorder %v3186_v2, 0.0  ;;  %vm4211_vm8 = vcmp.ge.f32.partialorder %v3190_v62, 0.0  ;;  %v4212_v43 = vld [vmem:[#allocation24_spill] sm:$0xff] }
 0x1da   :  { %v3692_v20 = vmul.f32 0.01, %v4196_v39  ;;  %4199 = vst [vmem:[#allocation16_spill] sm:$0xff] %v3695_v48  ;;  %v4202_v39 = vld [vmem:[#allocation18_spill] sm:$0xff]  ;;  %v4203_v48 = vld [vmem:[#allocation19_spill] sm:$0xff]  ;;  %v1448_v60 = vsel %vm4210_vm7, %v3186_v2, %v3441_v40  ;;  %v1449_v21 = vsel %vm4211_vm8, %v3190_v62, %v3452_v30  ;;  %1510 = vst.msk [vmem:[%s4100_s4 + $0x90] sm:$0xff] %vm676_vm3, %v1446_v16 }
 0x1db   :  { %v3713_v56 = vmul.f32 0.01, %v4202_v39  ;;  %v4207_v39 = vld [vmem:[#allocation21_spill] sm:$0xff]  ;;  %vm4214_vm7 = vcmp.ge.f32.partialorder %v3202_v6, 0.0  ;;  %vm4216_vm8 = vcmp.ge.f32.partialorder %v3206_v11, 0.0  ;;  %1512 = vst.msk [vmem:[%s4100_s4 + $0xa0] sm:$0xff] %vm676_vm3, %v1448_v60 }
 0x1dc   :  { %4197 = vst [vmem:[#allocation22_spill] sm:$0xff] %v3692_v20  ;;  %v3716_v20 = vmul.f32 0.01, %v4203_v48  ;;  %vm1363_vm10 = vcmp.ge.f32.partialorder %v4207_v39, 0.0  ;;  %v3732_v48 = vmul.f32 0.01, %v4207_v39  ;;  %v1452_v62 = vsel %vm4214_vm7, %v3202_v6, %v3469_v32 }
 0x1dd   :  { %v4215_v40 = vld [vmem:[#allocation25_spill] sm:$0xff]  ;;  %1513 = vst.msk [vmem:[%s4100_s4 + $0xa8] sm:$0xff] %vm676_vm3, %v1449_v21  ;;  %vm4220_vm7 = vcmp.ge.f32.partialorder %v3222_v52, 0.0  ;;  %1516 = vst.msk [vmem:[%s4100_s4 + $0xc0] sm:$0xff] %vm676_vm3, %v1452_v62  ;;  %v4253_v16 = vld [vmem:[#allocation35_spill] sm:$0xff] }
 0x1de   :  { %4204 = vst [vmem:[#allocation36_spill] sm:$0xff] %v3716_v20  ;;  %v4208_v20 = vld [vmem:[#allocation23_spill] sm:$0xff]  ;;  %v1453_v30 = vsel %vm4216_vm8, %v3206_v11, %v4215_v40  ;;  %v4219_v11 = vld [vmem:[#allocation26_spill] sm:$0xff]  ;;  %vm4222_vm8 = vcmp.ge.f32.partialorder %v3234_v42, 0.0  ;;  %v4254_v60 = vld [vmem:[#allocation8_spill] sm:$0xff] }
 0x1df   :  { %v1447_v4 = vsel %vm4209_vm9, %v3182_v0, %v4208_v20  ;;  %v1450_v0 = vsel %vm1322_vm11, %v3194_v19, %v4212_v43  ;;  %vm4213_vm9 = vcmp.ge.f32.partialorder %v3198_v18, 0.0  ;;  %v1454_v19 = vsel %vm1326_vm12, %v3210_v14, %v3475_v61  ;;  %1517 = vst.msk [vmem:[%s4100_s4 + $0xc8] sm:$0xff] %vm676_vm3, %v1453_v30  ;;  %v4227_v61 = vld [vmem:[#allocation28_spill] sm:$0xff]  ;;  %v4262_v40 = vld [vmem:[#allocation15_spill] sm:$0xff] }
 0x1e0   :  { %v1451_v2 = vsel %vm4213_vm9, %v3198_v18, %v3458_v23  ;;  %1511 = vst.msk [vmem:[%s4100_s4 + $0x98] sm:$0xff] %vm676_vm3, %v1447_v4  ;;  %vm4217_vm11 = vcmp.ge.f32.partialorder %v3214_v13, 0.0  ;;  %vm4218_vm9 = vcmp.ge.f32.partialorder %v3218_v36, 0.0  ;;  %v1457_v23 = vsel %vm4220_vm7, %v3222_v52, %v4219_v11  ;;  %1514 = vst.msk [vmem:[%s4100_s4 + $0xb0] sm:$0xff] %vm676_vm3, %v1450_v0  ;;  %v4259_v0 = vld [vmem:[#allocation11_spill] sm:$0xff] }
 0x1e1   :  { %v1455_v18 = vsel %vm4217_vm11, %v3214_v13, %v3486_v35  ;;  %v1456_v6 = vsel %vm4218_vm9, %v3218_v36, %v3489_v45  ;;  %1515 = vst.msk [vmem:[%s4100_s4 + $0xb8] sm:$0xff] %vm676_vm3, %v1451_v2  ;;  %v1458_v14 = vsel %vm1330_vm13, %v3226_v31, %v3505_v29  ;;  %vm4221_vm12 = vcmp.ge.f32.partialorder %v3230_v10, 0.0  ;;  %1518 = vst.msk [vmem:[%s4100_s4 + $0xd0] sm:$0xff] %vm676_vm3, %v1454_v19  ;;  %v4233_v35 = vld [vmem:[#allocation13_spill] sm:$0xff]  ;;  %v4236_v29 = vld [vmem:[#allocation31_spill] sm:$0xff] }
 0x1e2   :  { %v1459_v13 = vsel %vm4221_vm12, %v3230_v10, %v3508_v22  ;;  %v1460_v36 = vsel %vm4222_vm8, %v3234_v42, %v3511_v54  ;;  %vm4223_vm11 = vcmp.ge.f32.partialorder %v3238_v34, 0.0  ;;  %1519 = vst.msk [vmem:[%s4100_s4 + $0xd8] sm:$0xff] %vm676_vm3, %v1455_v18  ;;  %1520 = vst.msk [vmem:[%s4100_s4 + $0xe0] sm:$0xff] %vm676_vm3, %v1456_v6  ;;  %v1462_v31 = vsel %vm1334_vm14, %v3242_v53, %v3528_v41  ;;  %v4224_v10 = vld [vmem:[#allocation27_spill] sm:$0xff]  ;;  %v4229_v53 = vld [vmem:[#allocation29_spill] sm:$0xff] }
 0x1e3   :  { %v1461_v52 = vsel %vm4223_vm11, %v3238_v34, %v3525_v27  ;;  %1521 = vst.msk [vmem:[%s4100_s4 + $0xe8] sm:$0xff] %vm676_vm3, %v1457_v23  ;;  %vm4225_vm13 = vcmp.ge.f32.partialorder %v3246_v5, 0.0  ;;  %vm4226_vm9 = vcmp.ge.f32.partialorder %v3250_v44, 0.0  ;;  %vm4228_vm7 = vcmp.ge.f32.partialorder %v3254_v63, 0.0  ;;  %1522 = vst.msk [vmem:[%s4100_s4 + $0xf0] sm:$0xff] %vm676_vm3, %v1458_v14  ;;  %v4238_v27 = vld [vmem:[#allocation32_spill] sm:$0xff] }
 0x1e4   :  { %v1463_v42 = vsel %vm4225_vm13, %v3246_v5, %v4224_v10  ;;  %v1464_v34 = vsel %vm4226_vm9, %v3250_v44, %v3545_v46  ;;  %v1465_v32 = vsel %vm4228_vm7, %v3254_v63, %v4227_v61  ;;  %1523 = vst.msk [vmem:[%s4100_s4 + $0xf8] sm:$0xff] %vm676_vm3, %v1459_v13  ;;  %1524 = vst.msk [vmem:[%s4100_s4 + $0x100] sm:$0xff] %vm676_vm3, %v1460_v36  ;;  %vm4230_vm14 = vcmp.ge.f32.partialorder %v3262_v55, 0.0  ;;  %v4231_v63 = vld [vmem:[#allocation12_spill] sm:$0xff]  ;;  %v4261_v62 = vld [vmem:[#allocation22_spill] sm:$0xff] }
 0x1e5   :  { %1525 = vst.msk [vmem:[%s4100_s4 + $0x108] sm:$0xff] %vm676_vm3, %v1461_v52  ;;  %v1466_v5 = vsel %vm1338_vm15, %v3258_v15, %v4229_v53  ;;  %v1467_v44 = vsel %vm4230_vm14, %v3262_v55, %v3566_v33  ;;  %vm4232_vm12 = vcmp.ge.f32.partialorder %v4171_v47, 0.0  ;;  %vm4234_vm8 = vcmp.ge.f32.partialorder %v4173_v49, 0.0  ;;  %1526 = vst.msk [vmem:[%s4100_s4 + $0x110] sm:$0xff] %vm676_vm3, %v1462_v31  ;;  %v4235_v15 = vld [vmem:[#allocation30_spill] sm:$0xff]  ;;  %v4240_v46 = vld [vmem:[#allocation4_spill] sm:$0xff] }
 0x1e6   :  { %v1468_v54 = vsel %vm4232_vm12, %v4171_v47, %v4231_v63  ;;  %v1469_v45 = vsel %vm4234_vm8, %v4173_v49, %v4233_v35  ;;  %1527 = vst.msk [vmem:[%s4100_s4 + $0x118] sm:$0xff] %vm676_vm3, %v1463_v42  ;;  %1528 = vst.msk [vmem:[%s4100_s4 + $0x120] sm:$0xff] %vm676_vm3, %v1464_v34  ;;  %v1470_v55 = vsel %vm1342_vm0, %v3274_v26, %v4235_v15  ;;  %vm4237_vm15 = vcmp.ge.f32.partialorder %v3278_v7, 0.0  ;;  %v4242_v26 = vld [vmem:[#allocation5_spill] sm:$0xff]  ;;  %v4267_v18 = vld [vmem:[#allocation18_spill] sm:$0xff] }
 0x1e7   :  { %1529 = vst.msk [vmem:[%s4100_s4 + $0x128] sm:$0xff] %vm676_vm3, %v1465_v32  ;;  %v1471_v22 = vsel %vm4237_vm15, %v3278_v7, %v4236_v29  ;;  %vm4239_vm11 = vcmp.ge.f32.partialorder %v3282_v8, 0.0  ;;  %vm4241_vm13 = vcmp.ge.f32.partialorder %v4178_v17, 0.0  ;;  %1530 = vst.msk [vmem:[%s4100_s4 + $0x130] sm:$0xff] %vm676_vm3, %v1466_v5  ;;  %v1474_v7 = vsel %vm1346_vm1, %v4180_v1, %v4242_v26  ;;  %v4248_v1 = vld [vmem:[#allocation7_spill] sm:$0xff]  ;;  %v4269_v11 = vld [vmem:[#allocation36_spill] sm:$0xff] }
 0x1e8   :  { %v1472_v41 = vsel %vm4239_vm11, %v3282_v8, %v4238_v27  ;;  %v1473_v47 = vsel %vm4241_vm13, %v4178_v17, %v4240_v46  ;;  %1531 = vst.msk [vmem:[%s4100_s4 + $0x138] sm:$0xff] %vm676_vm3, %v1467_v44  ;;  %1532 = vst.msk [vmem:[%s4100_s4 + $0x140] sm:$0xff] %vm676_vm3, %v1468_v54  ;;  %v4243_v8 = vld [vmem:[#allocation6_spill] sm:$0xff]  ;;  %vm4244_vm0 = vcmp.ge.f32.partialorder %v4182_v51, 0.0  ;;  %vm4245_vm9 = vcmp.ge.f32.partialorder %v4184_v38, 0.0  ;;  %v4270_v23 = vld [vmem:[#allocation19_spill] sm:$0xff] }
 0x1e9   :  { %1533 = vst.msk [vmem:[%s4100_s4 + $0x148] sm:$0xff] %vm676_vm3, %v1469_v45  ;;  %v1475_v33 = vsel %vm4244_vm0, %v4182_v51, %v4243_v8  ;;  %v1476_v49 = vsel %vm4245_vm9, %v4184_v38, %v3629_v37  ;;  %v4246_v17 = vld [vmem:[#allocation14_spill] sm:$0xff]  ;;  %1534 = vst.msk [vmem:[%s4100_s4 + $0x150] sm:$0xff] %vm676_vm3, %v1470_v55  ;;  %v1478_v38 = vsel %vm1350_vm2, %v3306_v9, %v4248_v1  ;;  %vm4250_vm1 = vcmp.ge.f32.partialorder %v3310_v58, 0.0  ;;  %v4256_v9 = vld [vmem:[#allocation9_spill] sm:$0xff] }
 0x1ea   :  { %vm4247_vm7 = vcmp.ge.f32.partialorder %v4246_v17, 0.0  ;;  %1535 = vst.msk [vmem:[%s4100_s4 + $0x158] sm:$0xff] %vm676_vm3, %v1471_v22  ;;  %1536 = vst.msk [vmem:[%s4100_s4 + $0x160] sm:$0xff] %vm676_vm3, %v1472_v41  ;;  %v4251_v37 = vld [vmem:[#allocation34_spill] sm:$0xff]  ;;  %vm4252_vm14 = vcmp.ge.f32.partialorder %v3314_v12, 0.0  ;;  %vm4255_vm12 = vcmp.ge.f32.partialorder %v4254_v60, 0.0 }
 0x1eb   :  { %v1477_v20 = vsel %vm4247_vm7, %v4246_v17, %v3632_v50  ;;  %1537 = vst.msk [vmem:[%s4100_s4 + $0x168] sm:$0xff] %vm676_vm3, %v1473_v47  ;;  %v4249_v50 = vld [vmem:[#allocation33_spill] sm:$0xff]  ;;  %v1480_v4 = vsel %vm4252_vm14, %v3314_v12, %v4251_v37  ;;  %v1481_v21 = vsel %vm4255_vm12, %v4254_v60, %v4253_v16  ;;  %1538 = vst.msk [vmem:[%s4100_s4 + $0x170] sm:$0xff] %vm676_vm3, %v1474_v7  ;;  %v4257_v12 = vld [vmem:[#allocation10_spill] sm:$0xff]  ;;  %vm4258_vm2 = vcmp.ge.f32.partialorder %v4191_v57, 0.0 }
 0x1ec   :  { %v1479_v51 = vsel %vm4250_vm1, %v3310_v58, %v4249_v50  ;;  %1539 = vst.msk [vmem:[%s4100_s4 + $0x178] sm:$0xff] %vm676_vm3, %v1475_v33  ;;  %1540 = vst.msk [vmem:[%s4100_s4 + $0x180] sm:$0xff] %vm676_vm3, %v1476_v49  ;;  %v1482_v58 = vsel %vm1354_vm4, %v4189_v25, %v4256_v9  ;;  %v1483_v43 = vsel %vm4258_vm2, %v4191_v57, %v4257_v12  ;;  %vm4260_vm8 = vcmp.ge.f32.partialorder %v4193_v28, 0.0  ;;  %v4264_v57 = vld [vmem:[#allocation16_spill] sm:$0xff] }
 0x1ed   :  { %1541 = vst.msk [vmem:[%s4100_s4 + $0x188] sm:$0xff] %vm676_vm3, %v1477_v20  ;;  %v1484_v2 = vsel %vm4260_vm8, %v4193_v28, %v4259_v0  ;;  %vm4263_vm15 = vcmp.ge.f32.partialorder %v4262_v40, 0.0  ;;  %1542 = vst.msk [vmem:[%s4100_s4 + $0x190] sm:$0xff] %vm676_vm3, %v1478_v38  ;;  %v1486_v25 = vsel %vm1358_vm5, %v4198_v24, %v4264_v57  ;;  %v4265_v28 = vld [vmem:[#allocation17_spill] sm:$0xff]  ;;  %vm4266_vm4 = vcmp.ge.f32.partialorder %v4200_v3, 0.0  ;;  %v4272_v24 = vld [vmem:[#allocation20_spill] sm:$0xff] }
 0x1ee   :  { %v1485_v30 = vsel %vm4263_vm15, %v4262_v40, %v4261_v62  ;;  %1543 = vst.msk [vmem:[%s4100_s4 + $0x198] sm:$0xff] %vm676_vm3, %v1479_v51  ;;  %1544 = vst.msk [vmem:[%s4100_s4 + $0x1a0] sm:$0xff] %vm676_vm3, %v1480_v4  ;;  %v1487_v19 = vsel %vm4266_vm4, %v4200_v3, %v4265_v28  ;;  %vm4268_vm11 = vcmp.ge.f32.partialorder %v4267_v18, 0.0  ;;  %vm4271_vm13 = vcmp.ge.f32.partialorder %v4270_v23, 0.0 }
 0x1ef   :  { %1545 = vst.msk [vmem:[%s4100_s4 + $0x1a8] sm:$0xff] %vm676_vm3, %v1481_v21  ;;  %v1488_v6 = vsel %vm4268_vm11, %v4267_v18, %v3713_v56  ;;  %v1489_v14 = vsel %vm4271_vm13, %v4270_v23, %v4269_v11  ;;  %1546 = vst.msk [vmem:[%s4100_s4 + $0x1b0] sm:$0xff] %vm676_vm3, %v1482_v58  ;;  %v1490_v3 = vsel %vm1362_vm6, %v4205_v59, %v4272_v24 }
 0x1f0   :  { %1547 = vst.msk [vmem:[%s4100_s4 + $0x1b8] sm:$0xff] %vm676_vm3, %v1483_v43  ;;  %1548 = vst.msk [vmem:[%s4100_s4 + $0x1c0] sm:$0xff] %vm676_vm3, %v1484_v2  ;;  %v1491_v56 = vsel %vm1363_vm10, %v4207_v39, %v3732_v48 }
 0x1f1   :  { %1549 = vst.msk [vmem:[%s4100_s4 + $0x1c8] sm:$0xff] %vm676_vm3, %v1485_v30  ;;  %1550 = vst.msk [vmem:[%s4100_s4 + $0x1d0] sm:$0xff] %vm676_vm3, %v1486_v25 }
 0x1f2   :  { %1551 = vst.msk [vmem:[%s4100_s4 + $0x1d8] sm:$0xff] %vm676_vm3, %v1487_v19  ;;  %1552 = vst.msk [vmem:[%s4100_s4 + $0x1e0] sm:$0xff] %vm676_vm3, %v1488_v6 }
 0x1f3   :  { %1553 = vst.msk [vmem:[%s4100_s4 + $0x1e8] sm:$0xff] %vm676_vm3, %v1489_v14  ;;  %1554 = vst.msk [vmem:[%s4100_s4 + $0x1f0] sm:$0xff] %vm676_vm3, %v1490_v3 }
 0x1f4   :  { %1555 = vst.msk [vmem:[%s4100_s4 + $0x1f8] sm:$0xff] %vm676_vm3, %v1491_v56 }

</bundles_post_ra>
